<compile_context>
chip_gen: v5e
topology: v5e:2x2
jax: 0.10.0
libtpu: 0.0.40
codegen_flags: <defaults>
</compile_context>

<pallas_src>
import functools

import jax
import jax.numpy as jnp
from jax.experimental import pallas as pl
from jax.experimental.pallas import tpu as pltpu


# ----------------------------------------------------------------------------
# Fused kernel: Conv1d(+ReLU) -> input projection -> LSTM recurrence -> FC
# ----------------------------------------------------------------------------
def _fused_kernel(p_ref, wc_ref, bc_ref, wih_ref, whh_ref, bl_ref,
                  wfc_ref, bfc_ref, o_ref, *, T, B, H):
    # --- Conv1d as one im2col matmul + bias + ReLU (rows are time-major (t,b))
    feat = jnp.maximum(
        jnp.dot(p_ref[...], wc_ref[...], preferred_element_type=jnp.float32)
        + bc_ref[...],
        0.0)                                                    # (T*B, C_feat) f32

    # --- Hoisted input projection for ALL timesteps, bias folded in ----------
    # Lane-dense output (last dim 4H = 128); one matmul instead of T tiny ones.
    # i/f/o columns of wih/bl are already pre-scaled by 0.5 (half-tanh sigmoid).
    gates_x = (jnp.dot(feat.astype(jnp.bfloat16), wih_ref[...],
                       preferred_element_type=jnp.float32)
               + bl_ref[...])                                   # (T*B, 4H) f32

    whh = whh_ref[...]                                          # (H, 4H) bf16

    # --- LSTM time recurrence, fully unrolled (T is static) ------------------
    h = jnp.zeros((B, H), jnp.float32)
    c = jnp.zeros((B, H), jnp.float32)
    for t in range(T):
        g_pre = gates_x[t * B:(t + 1) * B, :] + jnp.dot(
            h.astype(jnp.bfloat16), whh, preferred_element_type=jnp.float32)
        # ONE full-slab tanh per step; sigmoid(x) = 0.5*tanh(x/2) + 0.5 since
        # the i/f/o pre-activations were already halved via the weight scaling.
        tnh = jnp.tanh(g_pre)                                   # (B, 4H) f32
        i_g = 0.5 * tnh[:, 0 * H:1 * H] + 0.5
        f_g = 0.5 * tnh[:, 1 * H:2 * H] + 0.5
        g_g = tnh[:, 2 * H:3 * H]                               # unscaled -> plain tanh
        o_g = 0.5 * tnh[:, 3 * H:4 * H] + 0.5
        c = f_g * c + i_g * g_g
        h = o_g * jnp.tanh(c)

    # --- Final FC on the last hidden state ------------------------------------
    o_ref[...] = (jnp.dot(h.astype(jnp.bfloat16), wfc_ref[...],
                          preferred_element_type=jnp.float32)
                  + bfc_ref[...])


# ----------------------------------------------------------------------------
# One-time (outside-jit) weight preparation: layouts, bf16 casts, gate scaling
# ----------------------------------------------------------------------------
def prepare_params(params):
    C_feat, C_in, K = params["conv_w"].shape
    H = params["w_hh"].shape[0]
    classes = params["w_fc"].shape[1]

    # sigmoid(x) = 0.5*tanh(0.5*x) + 0.5  -> pre-scale i/f/o gate columns by 0.5,
    # leave the g (cell candidate) columns untouched.  Gate order: [i, f, g, o].
    gate_scale = jnp.concatenate([
        jnp.full((2 * H,), 0.5, jnp.float32),   # i, f
        jnp.ones((H,), jnp.float32),            # g
        jnp.full((H,), 0.5, jnp.float32),       # o
    ])

    return {
        "w_conv": params["conv_w"].reshape(C_feat, C_in * K).T
                  .astype(jnp.bfloat16),                              # (Cin*K, Cfeat)
        "b_conv": params["conv_b"].reshape(1, C_feat).astype(jnp.float32),
        "w_ih": (params["w_ih"] * gate_scale[None, :]).astype(jnp.bfloat16),
        "w_hh": (params["w_hh"] * gate_scale[None, :]).astype(jnp.bfloat16),
        # b_lstm is assumed to already be (b_ih + b_hh) of the PyTorch LSTM.
        "b_lstm": (params["b_lstm"] * gate_scale).reshape(1, 4 * H)
                  .astype(jnp.float32),
        "w_fc": params["w_fc"].astype(jnp.bfloat16),                  # (H, classes)
        "b_fc": params["b_fc"].reshape(1, classes).astype(jnp.float32),
    }


# ----------------------------------------------------------------------------
# Full forward (== cnn_feed_lstm.forward for the instantiated submodules)
# ----------------------------------------------------------------------------
@jax.jit
def cnn_feed_lstm_forward(x, prep):
    """x: (B, C_in, L) float32, prep: prepare_params(...) output."""
    B, C_in, L = x.shape
    C_in_K, C_feat = prep["w_conv"].shape
    K = C_in_K // C_in
    H = prep["w_hh"].shape[0]
    classes = prep["w_fc"].shape[1]
    pad = (K - 1) // 2

    # im2col (only remaining wrapper glue; marked fusible into the pallas call):
    # rows ordered time-major (t, b), columns (ci, k) to match Conv1d weights.
    xp = jnp.pad(x, ((0, 0), (0, 0), (pad, pad)))
    cols = jnp.stack([xp[:, :, k:k + L] for k in range(K)], axis=-1)  # (B,Cin,L,K)
    patches = (jnp.transpose(cols, (2, 0, 1, 3))
               .reshape(L * B, C_in * K)
               .astype(jnp.bfloat16))

    kernel = functools.partial(_fused_kernel, T=L, B=B, H=H)
    vmem_specs = [pl.BlockSpec(memory_space=pltpu.MemorySpace.VMEM)
                  for _ in range(8)]

    # Single-shot flat VMEM kernel: no grid, no pipelining machinery.
    return pl.pallas_call(
        kernel,
        out_shape=jax.ShapeDtypeStruct((B, classes), jnp.float32),
        in_specs=vmem_specs,
        out_specs=pl.BlockSpec(memory_space=pltpu.MemorySpace.VMEM),
        compiler_params=pltpu.CompilerParams(
            allow_input_fusion=[True, False, False, False,
                                False, False, False, False]),
    )(patches, prep["w_conv"], prep["b_conv"], prep["w_ih"], prep["w_hh"],
      prep["b_lstm"], prep["w_fc"], prep["b_fc"])


# ----------------------------------------------------------------------------
# Pure-JAX f32 reference (for correctness check)
# ----------------------------------------------------------------------------
def reference_forward(x, params):
    B, C_in, L = x.shape
    w, b = params["conv_w"], params["conv_b"]
    C_out, _, K = w.shape
    pad = (K - 1) // 2
    xp = jnp.pad(x, ((0, 0), (0, 0), (pad, pad)))
    cols = jnp.stack([xp[:, :, k:k + L] for k in range(K)], axis=-1)  # (B,Cin,L,K)
    conv = jnp.einsum("bilk,oik->bol", cols, w) + b[None, :, None]
    feat = jnp.maximum(conv, 0.0).transpose(0, 2, 1)                  # (B, L, C_out)

    H = params["w_hh"].shape[0]
    h = jnp.zeros((B, H), jnp.float32)
    c = jnp.zeros((B, H), jnp.float32)
    for t in range(L):
        gates = feat[:, t, :] @ params["w_ih"] + h @ params["w_hh"] + params["b_lstm"]
        i = jax.nn.sigmoid(gates[:, 0 * H:1 * H])
        f = jax.nn.sigmoid(gates[:, 1 * H:2 * H])
        g = jnp.tanh(gates[:, 2 * H:3 * H])
        o = jax.nn.sigmoid(gates[:, 3 * H:4 * H])
        c = f * c + i * g
        h = o * jnp.tanh(c)
    return h @ params["w_fc"] + params["b_fc"]


if __name__ == "__main__":
    # Small shapes implied by the module: Conv1d features -> permute -> LSTM -> 4 classes.
    # TODO(synk): the PyTorch module takes injected cnn/rnn submodules; they are
    # instantiated here as Conv1d(k=3,pad=1)+ReLU and LSTM(H)+Linear(H->4).
    B, C_in, L = 2, 4, 16
    C_feat, H, K, CLASSES = 32, 32, 3, 4

    key = jax.random.PRNGKey(0)
    ks = jax.random.split(key, 8)
    params = {
        "conv_w": 0.1 * jax.random.normal(ks[0], (C_feat, C_in, K), jnp.float32),
        "conv_b": 0.1 * jax.random.normal(ks[1], (C_feat,), jnp.float32),
        "w_ih":   0.1 * jax.random.normal(ks[2], (C_feat, 4 * H), jnp.float32),
        "w_hh":   0.1 * jax.random.normal(ks[3], (H, 4 * H), jnp.float32),
        "b_lstm": 0.1 * jax.random.normal(ks[4], (4 * H,), jnp.float32),
        "w_fc":   0.1 * jax.random.normal(ks[5], (H, CLASSES), jnp.float32),
        "b_fc":   0.1 * jax.random.normal(ks[6], (CLASSES,), jnp.float32),
    }
    x = jax.random.normal(ks[7], (B, C_in, L), jnp.float32)

    prep = prepare_params(params)   # one-time weight prep, outside the jitted hot path

    out = jax.block_until_ready(cnn_feed_lstm_forward(x, prep))
    ref = jax.block_until_ready(reference_forward(x, params))
    assert out.shape == (B, CLASSES), out.shape
    assert jnp.allclose(out, ref, atol=2e-2, rtol=2e-2), (out, ref)
    print("KERNEL_OK")
</pallas_src>

<mosaic_0001>
module attributes {stable_mosaic.version = 11 : i64} {
  func.func @_fused_kernel(%arg0: memref<32x12xbf16, #tpu.memory_space<vmem>>, %arg1: memref<12x32xbf16, #tpu.memory_space<vmem>>, %arg2: memref<1x32xf32, #tpu.memory_space<vmem>>, %arg3: memref<32x128xbf16, #tpu.memory_space<vmem>>, %arg4: memref<32x128xbf16, #tpu.memory_space<vmem>>, %arg5: memref<1x128xf32, #tpu.memory_space<vmem>>, %arg6: memref<32x4xbf16, #tpu.memory_space<vmem>>, %arg7: memref<1x4xf32, #tpu.memory_space<vmem>>, %arg8: memref<2x4xf32, #tpu.memory_space<vmem>>) attributes {dimension_semantics = [], scalar_prefetch = 0 : i64, scratch_operands = 0 : i64, tpu.core_type = #tpu.core_type<tc>} {
    %c0 = arith.constant 0 : index
    %c0_0 = arith.constant 0 : index
    %0 = vector.load %arg0[%c0, %c0_0] : memref<32x12xbf16, #tpu.memory_space<vmem>>, vector<32x12xbf16>
    %c0_1 = arith.constant 0 : index
    %c0_2 = arith.constant 0 : index
    %1 = vector.load %arg1[%c0_1, %c0_2] : memref<12x32xbf16, #tpu.memory_space<vmem>>, vector<12x32xbf16>
    %cst = arith.constant dense<0.000000e+00> : vector<32x32xf32>
    %2 = tpu.matmul %0, %1, %cst {dimension_numbers = #tpu.dot_dimension_numbers<[1], [0], [0], [1], [0, 0, 1, 1], [], []>} : vector<32x12xbf16>, vector<12x32xbf16>, vector<32x32xf32> -> vector<32x32xf32>
    %c0_3 = arith.constant 0 : index
    %c0_4 = arith.constant 0 : index
    %3 = vector.load %arg2[%c0_3, %c0_4] : memref<1x32xf32, #tpu.memory_space<vmem>>, vector<1x32xf32>
    %4 = vector.broadcast %3 : vector<1x32xf32> to vector<32x32xf32>
    %5 = arith.addf %2, %4 : vector<32x32xf32>
    %cst_5 = arith.constant 0.000000e+00 : f32
    %6 = vector.broadcast %cst_5 : f32 to vector<32x32xf32>
    %7 = arith.maximumf %5, %6 : vector<32x32xf32>
    %8 = arith.truncf %7 : vector<32x32xf32> to vector<32x32xbf16>
    %c0_6 = arith.constant 0 : index
    %c0_7 = arith.constant 0 : index
    %9 = vector.load %arg3[%c0_6, %c0_7] : memref<32x128xbf16, #tpu.memory_space<vmem>>, vector<32x128xbf16>
    %cst_8 = arith.constant dense<0.000000e+00> : vector<32x128xf32>
    %10 = tpu.matmul %8, %9, %cst_8 {dimension_numbers = #tpu.dot_dimension_numbers<[1], [0], [0], [1], [0, 0, 1, 1], [], []>} : vector<32x32xbf16>, vector<32x128xbf16>, vector<32x128xf32> -> vector<32x128xf32>
    %c0_9 = arith.constant 0 : index
    %c0_10 = arith.constant 0 : index
    %11 = vector.load %arg5[%c0_9, %c0_10] : memref<1x128xf32, #tpu.memory_space<vmem>>, vector<1x128xf32>
    %12 = vector.broadcast %11 : vector<1x128xf32> to vector<32x128xf32>
    %13 = arith.addf %10, %12 : vector<32x128xf32>
    %c0_11 = arith.constant 0 : index
    %c0_12 = arith.constant 0 : index
    %14 = vector.load %arg4[%c0_11, %c0_12] : memref<32x128xbf16, #tpu.memory_space<vmem>>, vector<32x128xbf16>
    %cst_13 = arith.constant 0.000000e+00 : f32
    %15 = vector.broadcast %cst_13 : f32 to vector<2x32xf32>
    %cst_14 = arith.constant 0.000000e+00 : f32
    %16 = vector.broadcast %cst_14 : f32 to vector<2x32xf32>
    %17 = vector.extract_strided_slice %13 {offsets = [0, 0], sizes = [2, 128], strides = [1, 1]} : vector<32x128xf32> to vector<2x128xf32>
    %18 = arith.truncf %15 : vector<2x32xf32> to vector<2x32xbf16>
    %cst_15 = arith.constant dense<0.000000e+00> : vector<2x128xf32>
    %19 = tpu.matmul %18, %14, %cst_15 {dimension_numbers = #tpu.dot_dimension_numbers<[1], [0], [0], [1], [0, 0, 1, 1], [], []>} : vector<2x32xbf16>, vector<32x128xbf16>, vector<2x128xf32> -> vector<2x128xf32>
    %20 = arith.addf %17, %19 : vector<2x128xf32>
    %21 = math.tanh %20 : vector<2x128xf32>
    %22 = vector.extract_strided_slice %21 {offsets = [0, 0], sizes = [2, 32], strides = [1, 1]} : vector<2x128xf32> to vector<2x32xf32>
    %cst_16 = arith.constant 5.000000e-01 : f32
    %23 = vector.broadcast %cst_16 : f32 to vector<2x32xf32>
    %24 = arith.mulf %23, %22 : vector<2x32xf32>
    %cst_17 = arith.constant 5.000000e-01 : f32
    %25 = vector.broadcast %cst_17 : f32 to vector<2x32xf32>
    %26 = arith.addf %24, %25 : vector<2x32xf32>
    %27 = vector.extract_strided_slice %21 {offsets = [0, 32], sizes = [2, 32], strides = [1, 1]} : vector<2x128xf32> to vector<2x32xf32>
    %cst_18 = arith.constant 5.000000e-01 : f32
    %28 = vector.broadcast %cst_18 : f32 to vector<2x32xf32>
    %29 = arith.mulf %28, %27 : vector<2x32xf32>
    %cst_19 = arith.constant 5.000000e-01 : f32
    %30 = vector.broadcast %cst_19 : f32 to vector<2x32xf32>
    %31 = arith.addf %29, %30 : vector<2x32xf32>
    %32 = vector.extract_strided_slice %21 {offsets = [0, 64], sizes = [2, 32], strides = [1, 1]} : vector<2x128xf32> to vector<2x32xf32>
    %33 = vector.extract_strided_slice %21 {offsets = [0, 96], sizes = [2, 32], strides = [1, 1]} : vector<2x128xf32> to vector<2x32xf32>
    %cst_20 = arith.constant 5.000000e-01 : f32
    %34 = vector.broadcast %cst_20 : f32 to vector<2x32xf32>
    %35 = arith.mulf %34, %33 : vector<2x32xf32>
    %cst_21 = arith.constant 5.000000e-01 : f32
    %36 = vector.broadcast %cst_21 : f32 to vector<2x32xf32>
    %37 = arith.addf %35, %36 : vector<2x32xf32>
    %38 = arith.mulf %31, %16 : vector<2x32xf32>
    %39 = arith.mulf %26, %32 : vector<2x32xf32>
    %40 = arith.addf %38, %39 : vector<2x32xf32>
    %41 = math.tanh %40 : vector<2x32xf32>
    %42 = arith.mulf %37, %41 : vector<2x32xf32>
    %43 = vector.extract_strided_slice %13 {offsets = [2, 0], sizes = [2, 128], strides = [1, 1]} : vector<32x128xf32> to vector<2x128xf32>
    %44 = arith.truncf %42 : vector<2x32xf32> to vector<2x32xbf16>
    %cst_22 = arith.constant dense<0.000000e+00> : vector<2x128xf32>
    %45 = tpu.matmul %44, %14, %cst_22 {dimension_numbers = #tpu.dot_dimension_numbers<[1], [0], [0], [1], [0, 0, 1, 1], [], []>} : vector<2x32xbf16>, vector<32x128xbf16>, vector<2x128xf32> -> vector<2x128xf32>
    %46 = arith.addf %43, %45 : vector<2x128xf32>
    %47 = math.tanh %46 : vector<2x128xf32>
    %48 = vector.extract_strided_slice %47 {offsets = [0, 0], sizes = [2, 32], strides = [1, 1]} : vector<2x128xf32> to vector<2x32xf32>
    %cst_23 = arith.constant 5.000000e-01 : f32
    %49 = vector.broadcast %cst_23 : f32 to vector<2x32xf32>
    %50 = arith.mulf %49, %48 : vector<2x32xf32>
    %cst_24 = arith.constant 5.000000e-01 : f32
    %51 = vector.broadcast %cst_24 : f32 to vector<2x32xf32>
    %52 = arith.addf %50, %51 : vector<2x32xf32>
    %53 = vector.extract_strided_slice %47 {offsets = [0, 32], sizes = [2, 32], strides = [1, 1]} : vector<2x128xf32> to vector<2x32xf32>
    %cst_25 = arith.constant 5.000000e-01 : f32
    %54 = vector.broadcast %cst_25 : f32 to vector<2x32xf32>
    %55 = arith.mulf %54, %53 : vector<2x32xf32>
    %cst_26 = arith.constant 5.000000e-01 : f32
    %56 = vector.broadcast %cst_26 : f32 to vector<2x32xf32>
    %57 = arith.addf %55, %56 : vector<2x32xf32>
    %58 = vector.extract_strided_slice %47 {offsets = [0, 64], sizes = [2, 32], strides = [1, 1]} : vector<2x128xf32> to vector<2x32xf32>
    %59 = vector.extract_strided_slice %47 {offsets = [0, 96], sizes = [2, 32], strides = [1, 1]} : vector<2x128xf32> to vector<2x32xf32>
    %cst_27 = arith.constant 5.000000e-01 : f32
    %60 = vector.broadcast %cst_27 : f32 to vector<2x32xf32>
    %61 = arith.mulf %60, %59 : vector<2x32xf32>
    %cst_28 = arith.constant 5.000000e-01 : f32
    %62 = vector.broadcast %cst_28 : f32 to vector<2x32xf32>
    %63 = arith.addf %61, %62 : vector<2x32xf32>
    %64 = arith.mulf %57, %40 : vector<2x32xf32>
    %65 = arith.mulf %52, %58 : vector<2x32xf32>
    %66 = arith.addf %64, %65 : vector<2x32xf32>
    %67 = math.tanh %66 : vector<2x32xf32>
    %68 = arith.mulf %63, %67 : vector<2x32xf32>
    %69 = vector.extract_strided_slice %13 {offsets = [4, 0], sizes = [2, 128], strides = [1, 1]} : vector<32x128xf32> to vector<2x128xf32>
    %70 = arith.truncf %68 : vector<2x32xf32> to vector<2x32xbf16>
    %cst_29 = arith.constant dense<0.000000e+00> : vector<2x128xf32>
    %71 = tpu.matmul %70, %14, %cst_29 {dimension_numbers = #tpu.dot_dimension_numbers<[1], [0], [0], [1], [0, 0, 1, 1], [], []>} : vector<2x32xbf16>, vector<32x128xbf16>, vector<2x128xf32> -> vector<2x128xf32>
    %72 = arith.addf %69, %71 : vector<2x128xf32>
    %73 = math.tanh %72 : vector<2x128xf32>
    %74 = vector.extract_strided_slice %73 {offsets = [0, 0], sizes = [2, 32], strides = [1, 1]} : vector<2x128xf32> to vector<2x32xf32>
    %cst_30 = arith.constant 5.000000e-01 : f32
    %75 = vector.broadcast %cst_30 : f32 to vector<2x32xf32>
    %76 = arith.mulf %75, %74 : vector<2x32xf32>
    %cst_31 = arith.constant 5.000000e-01 : f32
    %77 = vector.broadcast %cst_31 : f32 to vector<2x32xf32>
    %78 = arith.addf %76, %77 : vector<2x32xf32>
    %79 = vector.extract_strided_slice %73 {offsets = [0, 32], sizes = [2, 32], strides = [1, 1]} : vector<2x128xf32> to vector<2x32xf32>
    %cst_32 = arith.constant 5.000000e-01 : f32
    %80 = vector.broadcast %cst_32 : f32 to vector<2x32xf32>
    %81 = arith.mulf %80, %79 : vector<2x32xf32>
    %cst_33 = arith.constant 5.000000e-01 : f32
    %82 = vector.broadcast %cst_33 : f32 to vector<2x32xf32>
    %83 = arith.addf %81, %82 : vector<2x32xf32>
    %84 = vector.extract_strided_slice %73 {offsets = [0, 64], sizes = [2, 32], strides = [1, 1]} : vector<2x128xf32> to vector<2x32xf32>
    %85 = vector.extract_strided_slice %73 {offsets = [0, 96], sizes = [2, 32], strides = [1, 1]} : vector<2x128xf32> to vector<2x32xf32>
    %cst_34 = arith.constant 5.000000e-01 : f32
    %86 = vector.broadcast %cst_34 : f32 to vector<2x32xf32>
    %87 = arith.mulf %86, %85 : vector<2x32xf32>
    %cst_35 = arith.constant 5.000000e-01 : f32
    %88 = vector.broadcast %cst_35 : f32 to vector<2x32xf32>
    %89 = arith.addf %87, %88 : vector<2x32xf32>
    %90 = arith.mulf %83, %66 : vector<2x32xf32>
    %91 = arith.mulf %78, %84 : vector<2x32xf32>
    %92 = arith.addf %90, %91 : vector<2x32xf32>
    %93 = math.tanh %92 : vector<2x32xf32>
    %94 = arith.mulf %89, %93 : vector<2x32xf32>
    %95 = vector.extract_strided_slice %13 {offsets = [6, 0], sizes = [2, 128], strides = [1, 1]} : vector<32x128xf32> to vector<2x128xf32>
    %96 = arith.truncf %94 : vector<2x32xf32> to vector<2x32xbf16>
    %cst_36 = arith.constant dense<0.000000e+00> : vector<2x128xf32>
    %97 = tpu.matmul %96, %14, %cst_36 {dimension_numbers = #tpu.dot_dimension_numbers<[1], [0], [0], [1], [0, 0, 1, 1], [], []>} : vector<2x32xbf16>, vector<32x128xbf16>, vector<2x128xf32> -> vector<2x128xf32>
    %98 = arith.addf %95, %97 : vector<2x128xf32>
    %99 = math.tanh %98 : vector<2x128xf32>
    %100 = vector.extract_strided_slice %99 {offsets = [0, 0], sizes = [2, 32], strides = [1, 1]} : vector<2x128xf32> to vector<2x32xf32>
    %cst_37 = arith.constant 5.000000e-01 : f32
    %101 = vector.broadcast %cst_37 : f32 to vector<2x32xf32>
    %102 = arith.mulf %101, %100 : vector<2x32xf32>
    %cst_38 = arith.constant 5.000000e-01 : f32
    %103 = vector.broadcast %cst_38 : f32 to vector<2x32xf32>
    %104 = arith.addf %102, %103 : vector<2x32xf32>
    %105 = vector.extract_strided_slice %99 {offsets = [0, 32], sizes = [2, 32], strides = [1, 1]} : vector<2x128xf32> to vector<2x32xf32>
    %cst_39 = arith.constant 5.000000e-01 : f32
    %106 = vector.broadcast %cst_39 : f32 to vector<2x32xf32>
    %107 = arith.mulf %106, %105 : vector<2x32xf32>
    %cst_40 = arith.constant 5.000000e-01 : f32
    %108 = vector.broadcast %cst_40 : f32 to vector<2x32xf32>
    %109 = arith.addf %107, %108 : vector<2x32xf32>
    %110 = vector.extract_strided_slice %99 {offsets = [0, 64], sizes = [2, 32], strides = [1, 1]} : vector<2x128xf32> to vector<2x32xf32>
    %111 = vector.extract_strided_slice %99 {offsets = [0, 96], sizes = [2, 32], strides = [1, 1]} : vector<2x128xf32> to vector<2x32xf32>
    %cst_41 = arith.constant 5.000000e-01 : f32
    %112 = vector.broadcast %cst_41 : f32 to vector<2x32xf32>
    %113 = arith.mulf %112, %111 : vector<2x32xf32>
    %cst_42 = arith.constant 5.000000e-01 : f32
    %114 = vector.broadcast %cst_42 : f32 to vector<2x32xf32>
    %115 = arith.addf %113, %114 : vector<2x32xf32>
    %116 = arith.mulf %109, %92 : vector<2x32xf32>
    %117 = arith.mulf %104, %110 : vector<2x32xf32>
    %118 = arith.addf %116, %117 : vector<2x32xf32>
    %119 = math.tanh %118 : vector<2x32xf32>
    %120 = arith.mulf %115, %119 : vector<2x32xf32>
    %121 = vector.extract_strided_slice %13 {offsets = [8, 0], sizes = [2, 128], strides = [1, 1]} : vector<32x128xf32> to vector<2x128xf32>
    %122 = arith.truncf %120 : vector<2x32xf32> to vector<2x32xbf16>
    %cst_43 = arith.constant dense<0.000000e+00> : vector<2x128xf32>
    %123 = tpu.matmul %122, %14, %cst_43 {dimension_numbers = #tpu.dot_dimension_numbers<[1], [0], [0], [1], [0, 0, 1, 1], [], []>} : vector<2x32xbf16>, vector<32x128xbf16>, vector<2x128xf32> -> vector<2x128xf32>
    %124 = arith.addf %121, %123 : vector<2x128xf32>
    %125 = math.tanh %124 : vector<2x128xf32>
    %126 = vector.extract_strided_slice %125 {offsets = [0, 0], sizes = [2, 32], strides = [1, 1]} : vector<2x128xf32> to vector<2x32xf32>
    %cst_44 = arith.constant 5.000000e-01 : f32
    %127 = vector.broadcast %cst_44 : f32 to vector<2x32xf32>
    %128 = arith.mulf %127, %126 : vector<2x32xf32>
    %cst_45 = arith.constant 5.000000e-01 : f32
    %129 = vector.broadcast %cst_45 : f32 to vector<2x32xf32>
    %130 = arith.addf %128, %129 : vector<2x32xf32>
    %131 = vector.extract_strided_slice %125 {offsets = [0, 32], sizes = [2, 32], strides = [1, 1]} : vector<2x128xf32> to vector<2x32xf32>
    %cst_46 = arith.constant 5.000000e-01 : f32
    %132 = vector.broadcast %cst_46 : f32 to vector<2x32xf32>
    %133 = arith.mulf %132, %131 : vector<2x32xf32>
    %cst_47 = arith.constant 5.000000e-01 : f32
    %134 = vector.broadcast %cst_47 : f32 to vector<2x32xf32>
    %135 = arith.addf %133, %134 : vector<2x32xf32>
    %136 = vector.extract_strided_slice %125 {offsets = [0, 64], sizes = [2, 32], strides = [1, 1]} : vector<2x128xf32> to vector<2x32xf32>
    %137 = vector.extract_strided_slice %125 {offsets = [0, 96], sizes = [2, 32], strides = [1, 1]} : vector<2x128xf32> to vector<2x32xf32>
    %cst_48 = arith.constant 5.000000e-01 : f32
    %138 = vector.broadcast %cst_48 : f32 to vector<2x32xf32>
    %139 = arith.mulf %138, %137 : vector<2x32xf32>
    %cst_49 = arith.constant 5.000000e-01 : f32
    %140 = vector.broadcast %cst_49 : f32 to vector<2x32xf32>
    %141 = arith.addf %139, %140 : vector<2x32xf32>
    %142 = arith.mulf %135, %118 : vector<2x32xf32>
    %143 = arith.mulf %130, %136 : vector<2x32xf32>
    %144 = arith.addf %142, %143 : vector<2x32xf32>
    %145 = math.tanh %144 : vector<2x32xf32>
    %146 = arith.mulf %141, %145 : vector<2x32xf32>
    %147 = vector.extract_strided_slice %13 {offsets = [10, 0], sizes = [2, 128], strides = [1, 1]} : vector<32x128xf32> to vector<2x128xf32>
    %148 = arith.truncf %146 : vector<2x32xf32> to vector<2x32xbf16>
    %cst_50 = arith.constant dense<0.000000e+00> : vector<2x128xf32>
    %149 = tpu.matmul %148, %14, %cst_50 {dimension_numbers = #tpu.dot_dimension_numbers<[1], [0], [0], [1], [0, 0, 1, 1], [], []>} : vector<2x32xbf16>, vector<32x128xbf16>, vector<2x128xf32> -> vector<2x128xf32>
    %150 = arith.addf %147, %149 : vector<2x128xf32>
    %151 = math.tanh %150 : vector<2x128xf32>
    %152 = vector.extract_strided_slice %151 {offsets = [0, 0], sizes = [2, 32], strides = [1, 1]} : vector<2x128xf32> to vector<2x32xf32>
    %cst_51 = arith.constant 5.000000e-01 : f32
    %153 = vector.broadcast %cst_51 : f32 to vector<2x32xf32>
    %154 = arith.mulf %153, %152 : vector<2x32xf32>
    %cst_52 = arith.constant 5.000000e-01 : f32
    %155 = vector.broadcast %cst_52 : f32 to vector<2x32xf32>
    %156 = arith.addf %154, %155 : vector<2x32xf32>
    %157 = vector.extract_strided_slice %151 {offsets = [0, 32], sizes = [2, 32], strides = [1, 1]} : vector<2x128xf32> to vector<2x32xf32>
    %cst_53 = arith.constant 5.000000e-01 : f32
    %158 = vector.broadcast %cst_53 : f32 to vector<2x32xf32>
    %159 = arith.mulf %158, %157 : vector<2x32xf32>
    %cst_54 = arith.constant 5.000000e-01 : f32
    %160 = vector.broadcast %cst_54 : f32 to vector<2x32xf32>
    %161 = arith.addf %159, %160 : vector<2x32xf32>
    %162 = vector.extract_strided_slice %151 {offsets = [0, 64], sizes = [2, 32], strides = [1, 1]} : vector<2x128xf32> to vector<2x32xf32>
    %163 = vector.extract_strided_slice %151 {offsets = [0, 96], sizes = [2, 32], strides = [1, 1]} : vector<2x128xf32> to vector<2x32xf32>
    %cst_55 = arith.constant 5.000000e-01 : f32
    %164 = vector.broadcast %cst_55 : f32 to vector<2x32xf32>
    %165 = arith.mulf %164, %163 : vector<2x32xf32>
    %cst_56 = arith.constant 5.000000e-01 : f32
    %166 = vector.broadcast %cst_56 : f32 to vector<2x32xf32>
    %167 = arith.addf %165, %166 : vector<2x32xf32>
    %168 = arith.mulf %161, %144 : vector<2x32xf32>
    %169 = arith.mulf %156, %162 : vector<2x32xf32>
    %170 = arith.addf %168, %169 : vector<2x32xf32>
    %171 = math.tanh %170 : vector<2x32xf32>
    %172 = arith.mulf %167, %171 : vector<2x32xf32>
    %173 = vector.extract_strided_slice %13 {offsets = [12, 0], sizes = [2, 128], strides = [1, 1]} : vector<32x128xf32> to vector<2x128xf32>
    %174 = arith.truncf %172 : vector<2x32xf32> to vector<2x32xbf16>
    %cst_57 = arith.constant dense<0.000000e+00> : vector<2x128xf32>
    %175 = tpu.matmul %174, %14, %cst_57 {dimension_numbers = #tpu.dot_dimension_numbers<[1], [0], [0], [1], [0, 0, 1, 1], [], []>} : vector<2x32xbf16>, vector<32x128xbf16>, vector<2x128xf32> -> vector<2x128xf32>
    %176 = arith.addf %173, %175 : vector<2x128xf32>
    %177 = math.tanh %176 : vector<2x128xf32>
    %178 = vector.extract_strided_slice %177 {offsets = [0, 0], sizes = [2, 32], strides = [1, 1]} : vector<2x128xf32> to vector<2x32xf32>
    %cst_58 = arith.constant 5.000000e-01 : f32
    %179 = vector.broadcast %cst_58 : f32 to vector<2x32xf32>
    %180 = arith.mulf %179, %178 : vector<2x32xf32>
    %cst_59 = arith.constant 5.000000e-01 : f32
    %181 = vector.broadcast %cst_59 : f32 to vector<2x32xf32>
    %182 = arith.addf %180, %181 : vector<2x32xf32>
    %183 = vector.extract_strided_slice %177 {offsets = [0, 32], sizes = [2, 32], strides = [1, 1]} : vector<2x128xf32> to vector<2x32xf32>
    %cst_60 = arith.constant 5.000000e-01 : f32
    %184 = vector.broadcast %cst_60 : f32 to vector<2x32xf32>
    %185 = arith.mulf %184, %183 : vector<2x32xf32>
    %cst_61 = arith.constant 5.000000e-01 : f32
    %186 = vector.broadcast %cst_61 : f32 to vector<2x32xf32>
    %187 = arith.addf %185, %186 : vector<2x32xf32>
    %188 = vector.extract_strided_slice %177 {offsets = [0, 64], sizes = [2, 32], strides = [1, 1]} : vector<2x128xf32> to vector<2x32xf32>
    %189 = vector.extract_strided_slice %177 {offsets = [0, 96], sizes = [2, 32], strides = [1, 1]} : vector<2x128xf32> to vector<2x32xf32>
    %cst_62 = arith.constant 5.000000e-01 : f32
    %190 = vector.broadcast %cst_62 : f32 to vector<2x32xf32>
    %191 = arith.mulf %190, %189 : vector<2x32xf32>
    %cst_63 = arith.constant 5.000000e-01 : f32
    %192 = vector.broadcast %cst_63 : f32 to vector<2x32xf32>
    %193 = arith.addf %191, %192 : vector<2x32xf32>
    %194 = arith.mulf %187, %170 : vector<2x32xf32>
    %195 = arith.mulf %182, %188 : vector<2x32xf32>
    %196 = arith.addf %194, %195 : vector<2x32xf32>
    %197 = math.tanh %196 : vector<2x32xf32>
    %198 = arith.mulf %193, %197 : vector<2x32xf32>
    %199 = vector.extract_strided_slice %13 {offsets = [14, 0], sizes = [2, 128], strides = [1, 1]} : vector<32x128xf32> to vector<2x128xf32>
    %200 = arith.truncf %198 : vector<2x32xf32> to vector<2x32xbf16>
    %cst_64 = arith.constant dense<0.000000e+00> : vector<2x128xf32>
    %201 = tpu.matmul %200, %14, %cst_64 {dimension_numbers = #tpu.dot_dimension_numbers<[1], [0], [0], [1], [0, 0, 1, 1], [], []>} : vector<2x32xbf16>, vector<32x128xbf16>, vector<2x128xf32> -> vector<2x128xf32>
    %202 = arith.addf %199, %201 : vector<2x128xf32>
    %203 = math.tanh %202 : vector<2x128xf32>
    %204 = vector.extract_strided_slice %203 {offsets = [0, 0], sizes = [2, 32], strides = [1, 1]} : vector<2x128xf32> to vector<2x32xf32>
    %cst_65 = arith.constant 5.000000e-01 : f32
    %205 = vector.broadcast %cst_65 : f32 to vector<2x32xf32>
    %206 = arith.mulf %205, %204 : vector<2x32xf32>
    %cst_66 = arith.constant 5.000000e-01 : f32
    %207 = vector.broadcast %cst_66 : f32 to vector<2x32xf32>
    %208 = arith.addf %206, %207 : vector<2x32xf32>
    %209 = vector.extract_strided_slice %203 {offsets = [0, 32], sizes = [2, 32], strides = [1, 1]} : vector<2x128xf32> to vector<2x32xf32>
    %cst_67 = arith.constant 5.000000e-01 : f32
    %210 = vector.broadcast %cst_67 : f32 to vector<2x32xf32>
    %211 = arith.mulf %210, %209 : vector<2x32xf32>
    %cst_68 = arith.constant 5.000000e-01 : f32
    %212 = vector.broadcast %cst_68 : f32 to vector<2x32xf32>
    %213 = arith.addf %211, %212 : vector<2x32xf32>
    %214 = vector.extract_strided_slice %203 {offsets = [0, 64], sizes = [2, 32], strides = [1, 1]} : vector<2x128xf32> to vector<2x32xf32>
    %215 = vector.extract_strided_slice %203 {offsets = [0, 96], sizes = [2, 32], strides = [1, 1]} : vector<2x128xf32> to vector<2x32xf32>
    %cst_69 = arith.constant 5.000000e-01 : f32
    %216 = vector.broadcast %cst_69 : f32 to vector<2x32xf32>
    %217 = arith.mulf %216, %215 : vector<2x32xf32>
    %cst_70 = arith.constant 5.000000e-01 : f32
    %218 = vector.broadcast %cst_70 : f32 to vector<2x32xf32>
    %219 = arith.addf %217, %218 : vector<2x32xf32>
    %220 = arith.mulf %213, %196 : vector<2x32xf32>
    %221 = arith.mulf %208, %214 : vector<2x32xf32>
    %222 = arith.addf %220, %221 : vector<2x32xf32>
    %223 = math.tanh %222 : vector<2x32xf32>
    %224 = arith.mulf %219, %223 : vector<2x32xf32>
    %225 = vector.extract_strided_slice %13 {offsets = [16, 0], sizes = [2, 128], strides = [1, 1]} : vector<32x128xf32> to vector<2x128xf32>
    %226 = arith.truncf %224 : vector<2x32xf32> to vector<2x32xbf16>
    %cst_71 = arith.constant dense<0.000000e+00> : vector<2x128xf32>
    %227 = tpu.matmul %226, %14, %cst_71 {dimension_numbers = #tpu.dot_dimension_numbers<[1], [0], [0], [1], [0, 0, 1, 1], [], []>} : vector<2x32xbf16>, vector<32x128xbf16>, vector<2x128xf32> -> vector<2x128xf32>
    %228 = arith.addf %225, %227 : vector<2x128xf32>
    %229 = math.tanh %228 : vector<2x128xf32>
    %230 = vector.extract_strided_slice %229 {offsets = [0, 0], sizes = [2, 32], strides = [1, 1]} : vector<2x128xf32> to vector<2x32xf32>
    %cst_72 = arith.constant 5.000000e-01 : f32
    %231 = vector.broadcast %cst_72 : f32 to vector<2x32xf32>
    %232 = arith.mulf %231, %230 : vector<2x32xf32>
    %cst_73 = arith.constant 5.000000e-01 : f32
    %233 = vector.broadcast %cst_73 : f32 to vector<2x32xf32>
    %234 = arith.addf %232, %233 : vector<2x32xf32>
    %235 = vector.extract_strided_slice %229 {offsets = [0, 32], sizes = [2, 32], strides = [1, 1]} : vector<2x128xf32> to vector<2x32xf32>
    %cst_74 = arith.constant 5.000000e-01 : f32
    %236 = vector.broadcast %cst_74 : f32 to vector<2x32xf32>
    %237 = arith.mulf %236, %235 : vector<2x32xf32>
    %cst_75 = arith.constant 5.000000e-01 : f32
    %238 = vector.broadcast %cst_75 : f32 to vector<2x32xf32>
    %239 = arith.addf %237, %238 : vector<2x32xf32>
    %240 = vector.extract_strided_slice %229 {offsets = [0, 64], sizes = [2, 32], strides = [1, 1]} : vector<2x128xf32> to vector<2x32xf32>
    %241 = vector.extract_strided_slice %229 {offsets = [0, 96], sizes = [2, 32], strides = [1, 1]} : vector<2x128xf32> to vector<2x32xf32>
    %cst_76 = arith.constant 5.000000e-01 : f32
    %242 = vector.broadcast %cst_76 : f32 to vector<2x32xf32>
    %243 = arith.mulf %242, %241 : vector<2x32xf32>
    %cst_77 = arith.constant 5.000000e-01 : f32
    %244 = vector.broadcast %cst_77 : f32 to vector<2x32xf32>
    %245 = arith.addf %243, %244 : vector<2x32xf32>
    %246 = arith.mulf %239, %222 : vector<2x32xf32>
    %247 = arith.mulf %234, %240 : vector<2x32xf32>
    %248 = arith.addf %246, %247 : vector<2x32xf32>
    %249 = math.tanh %248 : vector<2x32xf32>
    %250 = arith.mulf %245, %249 : vector<2x32xf32>
    %251 = vector.extract_strided_slice %13 {offsets = [18, 0], sizes = [2, 128], strides = [1, 1]} : vector<32x128xf32> to vector<2x128xf32>
    %252 = arith.truncf %250 : vector<2x32xf32> to vector<2x32xbf16>
    %cst_78 = arith.constant dense<0.000000e+00> : vector<2x128xf32>
    %253 = tpu.matmul %252, %14, %cst_78 {dimension_numbers = #tpu.dot_dimension_numbers<[1], [0], [0], [1], [0, 0, 1, 1], [], []>} : vector<2x32xbf16>, vector<32x128xbf16>, vector<2x128xf32> -> vector<2x128xf32>
    %254 = arith.addf %251, %253 : vector<2x128xf32>
    %255 = math.tanh %254 : vector<2x128xf32>
    %256 = vector.extract_strided_slice %255 {offsets = [0, 0], sizes = [2, 32], strides = [1, 1]} : vector<2x128xf32> to vector<2x32xf32>
    %cst_79 = arith.constant 5.000000e-01 : f32
    %257 = vector.broadcast %cst_79 : f32 to vector<2x32xf32>
    %258 = arith.mulf %257, %256 : vector<2x32xf32>
    %cst_80 = arith.constant 5.000000e-01 : f32
    %259 = vector.broadcast %cst_80 : f32 to vector<2x32xf32>
    %260 = arith.addf %258, %259 : vector<2x32xf32>
    %261 = vector.extract_strided_slice %255 {offsets = [0, 32], sizes = [2, 32], strides = [1, 1]} : vector<2x128xf32> to vector<2x32xf32>
    %cst_81 = arith.constant 5.000000e-01 : f32
    %262 = vector.broadcast %cst_81 : f32 to vector<2x32xf32>
    %263 = arith.mulf %262, %261 : vector<2x32xf32>
    %cst_82 = arith.constant 5.000000e-01 : f32
    %264 = vector.broadcast %cst_82 : f32 to vector<2x32xf32>
    %265 = arith.addf %263, %264 : vector<2x32xf32>
    %266 = vector.extract_strided_slice %255 {offsets = [0, 64], sizes = [2, 32], strides = [1, 1]} : vector<2x128xf32> to vector<2x32xf32>
    %267 = vector.extract_strided_slice %255 {offsets = [0, 96], sizes = [2, 32], strides = [1, 1]} : vector<2x128xf32> to vector<2x32xf32>
    %cst_83 = arith.constant 5.000000e-01 : f32
    %268 = vector.broadcast %cst_83 : f32 to vector<2x32xf32>
    %269 = arith.mulf %268, %267 : vector<2x32xf32>
    %cst_84 = arith.constant 5.000000e-01 : f32
    %270 = vector.broadcast %cst_84 : f32 to vector<2x32xf32>
    %271 = arith.addf %269, %270 : vector<2x32xf32>
    %272 = arith.mulf %265, %248 : vector<2x32xf32>
    %273 = arith.mulf %260, %266 : vector<2x32xf32>
    %274 = arith.addf %272, %273 : vector<2x32xf32>
    %275 = math.tanh %274 : vector<2x32xf32>
    %276 = arith.mulf %271, %275 : vector<2x32xf32>
    %277 = vector.extract_strided_slice %13 {offsets = [20, 0], sizes = [2, 128], strides = [1, 1]} : vector<32x128xf32> to vector<2x128xf32>
    %278 = arith.truncf %276 : vector<2x32xf32> to vector<2x32xbf16>
    %cst_85 = arith.constant dense<0.000000e+00> : vector<2x128xf32>
    %279 = tpu.matmul %278, %14, %cst_85 {dimension_numbers = #tpu.dot_dimension_numbers<[1], [0], [0], [1], [0, 0, 1, 1], [], []>} : vector<2x32xbf16>, vector<32x128xbf16>, vector<2x128xf32> -> vector<2x128xf32>
    %280 = arith.addf %277, %279 : vector<2x128xf32>
    %281 = math.tanh %280 : vector<2x128xf32>
    %282 = vector.extract_strided_slice %281 {offsets = [0, 0], sizes = [2, 32], strides = [1, 1]} : vector<2x128xf32> to vector<2x32xf32>
    %cst_86 = arith.constant 5.000000e-01 : f32
    %283 = vector.broadcast %cst_86 : f32 to vector<2x32xf32>
    %284 = arith.mulf %283, %282 : vector<2x32xf32>
    %cst_87 = arith.constant 5.000000e-01 : f32
    %285 = vector.broadcast %cst_87 : f32 to vector<2x32xf32>
    %286 = arith.addf %284, %285 : vector<2x32xf32>
    %287 = vector.extract_strided_slice %281 {offsets = [0, 32], sizes = [2, 32], strides = [1, 1]} : vector<2x128xf32> to vector<2x32xf32>
    %cst_88 = arith.constant 5.000000e-01 : f32
    %288 = vector.broadcast %cst_88 : f32 to vector<2x32xf32>
    %289 = arith.mulf %288, %287 : vector<2x32xf32>
    %cst_89 = arith.constant 5.000000e-01 : f32
    %290 = vector.broadcast %cst_89 : f32 to vector<2x32xf32>
    %291 = arith.addf %289, %290 : vector<2x32xf32>
    %292 = vector.extract_strided_slice %281 {offsets = [0, 64], sizes = [2, 32], strides = [1, 1]} : vector<2x128xf32> to vector<2x32xf32>
    %293 = vector.extract_strided_slice %281 {offsets = [0, 96], sizes = [2, 32], strides = [1, 1]} : vector<2x128xf32> to vector<2x32xf32>
    %cst_90 = arith.constant 5.000000e-01 : f32
    %294 = vector.broadcast %cst_90 : f32 to vector<2x32xf32>
    %295 = arith.mulf %294, %293 : vector<2x32xf32>
    %cst_91 = arith.constant 5.000000e-01 : f32
    %296 = vector.broadcast %cst_91 : f32 to vector<2x32xf32>
    %297 = arith.addf %295, %296 : vector<2x32xf32>
    %298 = arith.mulf %291, %274 : vector<2x32xf32>
    %299 = arith.mulf %286, %292 : vector<2x32xf32>
    %300 = arith.addf %298, %299 : vector<2x32xf32>
    %301 = math.tanh %300 : vector<2x32xf32>
    %302 = arith.mulf %297, %301 : vector<2x32xf32>
    %303 = vector.extract_strided_slice %13 {offsets = [22, 0], sizes = [2, 128], strides = [1, 1]} : vector<32x128xf32> to vector<2x128xf32>
    %304 = arith.truncf %302 : vector<2x32xf32> to vector<2x32xbf16>
    %cst_92 = arith.constant dense<0.000000e+00> : vector<2x128xf32>
    %305 = tpu.matmul %304, %14, %cst_92 {dimension_numbers = #tpu.dot_dimension_numbers<[1], [0], [0], [1], [0, 0, 1, 1], [], []>} : vector<2x32xbf16>, vector<32x128xbf16>, vector<2x128xf32> -> vector<2x128xf32>
    %306 = arith.addf %303, %305 : vector<2x128xf32>
    %307 = math.tanh %306 : vector<2x128xf32>
    %308 = vector.extract_strided_slice %307 {offsets = [0, 0], sizes = [2, 32], strides = [1, 1]} : vector<2x128xf32> to vector<2x32xf32>
    %cst_93 = arith.constant 5.000000e-01 : f32
    %309 = vector.broadcast %cst_93 : f32 to vector<2x32xf32>
    %310 = arith.mulf %309, %308 : vector<2x32xf32>
    %cst_94 = arith.constant 5.000000e-01 : f32
    %311 = vector.broadcast %cst_94 : f32 to vector<2x32xf32>
    %312 = arith.addf %310, %311 : vector<2x32xf32>
    %313 = vector.extract_strided_slice %307 {offsets = [0, 32], sizes = [2, 32], strides = [1, 1]} : vector<2x128xf32> to vector<2x32xf32>
    %cst_95 = arith.constant 5.000000e-01 : f32
    %314 = vector.broadcast %cst_95 : f32 to vector<2x32xf32>
    %315 = arith.mulf %314, %313 : vector<2x32xf32>
    %cst_96 = arith.constant 5.000000e-01 : f32
    %316 = vector.broadcast %cst_96 : f32 to vector<2x32xf32>
    %317 = arith.addf %315, %316 : vector<2x32xf32>
    %318 = vector.extract_strided_slice %307 {offsets = [0, 64], sizes = [2, 32], strides = [1, 1]} : vector<2x128xf32> to vector<2x32xf32>
    %319 = vector.extract_strided_slice %307 {offsets = [0, 96], sizes = [2, 32], strides = [1, 1]} : vector<2x128xf32> to vector<2x32xf32>
    %cst_97 = arith.constant 5.000000e-01 : f32
    %320 = vector.broadcast %cst_97 : f32 to vector<2x32xf32>
    %321 = arith.mulf %320, %319 : vector<2x32xf32>
    %cst_98 = arith.constant 5.000000e-01 : f32
    %322 = vector.broadcast %cst_98 : f32 to vector<2x32xf32>
    %323 = arith.addf %321, %322 : vector<2x32xf32>
    %324 = arith.mulf %317, %300 : vector<2x32xf32>
    %325 = arith.mulf %312, %318 : vector<2x32xf32>
    %326 = arith.addf %324, %325 : vector<2x32xf32>
    %327 = math.tanh %326 : vector<2x32xf32>
    %328 = arith.mulf %323, %327 : vector<2x32xf32>
    %329 = vector.extract_strided_slice %13 {offsets = [24, 0], sizes = [2, 128], strides = [1, 1]} : vector<32x128xf32> to vector<2x128xf32>
    %330 = arith.truncf %328 : vector<2x32xf32> to vector<2x32xbf16>
    %cst_99 = arith.constant dense<0.000000e+00> : vector<2x128xf32>
    %331 = tpu.matmul %330, %14, %cst_99 {dimension_numbers = #tpu.dot_dimension_numbers<[1], [0], [0], [1], [0, 0, 1, 1], [], []>} : vector<2x32xbf16>, vector<32x128xbf16>, vector<2x128xf32> -> vector<2x128xf32>
    %332 = arith.addf %329, %331 : vector<2x128xf32>
    %333 = math.tanh %332 : vector<2x128xf32>
    %334 = vector.extract_strided_slice %333 {offsets = [0, 0], sizes = [2, 32], strides = [1, 1]} : vector<2x128xf32> to vector<2x32xf32>
    %cst_100 = arith.constant 5.000000e-01 : f32
    %335 = vector.broadcast %cst_100 : f32 to vector<2x32xf32>
    %336 = arith.mulf %335, %334 : vector<2x32xf32>
    %cst_101 = arith.constant 5.000000e-01 : f32
    %337 = vector.broadcast %cst_101 : f32 to vector<2x32xf32>
    %338 = arith.addf %336, %337 : vector<2x32xf32>
    %339 = vector.extract_strided_slice %333 {offsets = [0, 32], sizes = [2, 32], strides = [1, 1]} : vector<2x128xf32> to vector<2x32xf32>
    %cst_102 = arith.constant 5.000000e-01 : f32
    %340 = vector.broadcast %cst_102 : f32 to vector<2x32xf32>
    %341 = arith.mulf %340, %339 : vector<2x32xf32>
    %cst_103 = arith.constant 5.000000e-01 : f32
    %342 = vector.broadcast %cst_103 : f32 to vector<2x32xf32>
    %343 = arith.addf %341, %342 : vector<2x32xf32>
    %344 = vector.extract_strided_slice %333 {offsets = [0, 64], sizes = [2, 32], strides = [1, 1]} : vector<2x128xf32> to vector<2x32xf32>
    %345 = vector.extract_strided_slice %333 {offsets = [0, 96], sizes = [2, 32], strides = [1, 1]} : vector<2x128xf32> to vector<2x32xf32>
    %cst_104 = arith.constant 5.000000e-01 : f32
    %346 = vector.broadcast %cst_104 : f32 to vector<2x32xf32>
    %347 = arith.mulf %346, %345 : vector<2x32xf32>
    %cst_105 = arith.constant 5.000000e-01 : f32
    %348 = vector.broadcast %cst_105 : f32 to vector<2x32xf32>
    %349 = arith.addf %347, %348 : vector<2x32xf32>
    %350 = arith.mulf %343, %326 : vector<2x32xf32>
    %351 = arith.mulf %338, %344 : vector<2x32xf32>
    %352 = arith.addf %350, %351 : vector<2x32xf32>
    %353 = math.tanh %352 : vector<2x32xf32>
    %354 = arith.mulf %349, %353 : vector<2x32xf32>
    %355 = vector.extract_strided_slice %13 {offsets = [26, 0], sizes = [2, 128], strides = [1, 1]} : vector<32x128xf32> to vector<2x128xf32>
    %356 = arith.truncf %354 : vector<2x32xf32> to vector<2x32xbf16>
    %cst_106 = arith.constant dense<0.000000e+00> : vector<2x128xf32>
    %357 = tpu.matmul %356, %14, %cst_106 {dimension_numbers = #tpu.dot_dimension_numbers<[1], [0], [0], [1], [0, 0, 1, 1], [], []>} : vector<2x32xbf16>, vector<32x128xbf16>, vector<2x128xf32> -> vector<2x128xf32>
    %358 = arith.addf %355, %357 : vector<2x128xf32>
    %359 = math.tanh %358 : vector<2x128xf32>
    %360 = vector.extract_strided_slice %359 {offsets = [0, 0], sizes = [2, 32], strides = [1, 1]} : vector<2x128xf32> to vector<2x32xf32>
    %cst_107 = arith.constant 5.000000e-01 : f32
    %361 = vector.broadcast %cst_107 : f32 to vector<2x32xf32>
    %362 = arith.mulf %361, %360 : vector<2x32xf32>
    %cst_108 = arith.constant 5.000000e-01 : f32
    %363 = vector.broadcast %cst_108 : f32 to vector<2x32xf32>
    %364 = arith.addf %362, %363 : vector<2x32xf32>
    %365 = vector.extract_strided_slice %359 {offsets = [0, 32], sizes = [2, 32], strides = [1, 1]} : vector<2x128xf32> to vector<2x32xf32>
    %cst_109 = arith.constant 5.000000e-01 : f32
    %366 = vector.broadcast %cst_109 : f32 to vector<2x32xf32>
    %367 = arith.mulf %366, %365 : vector<2x32xf32>
    %cst_110 = arith.constant 5.000000e-01 : f32
    %368 = vector.broadcast %cst_110 : f32 to vector<2x32xf32>
    %369 = arith.addf %367, %368 : vector<2x32xf32>
    %370 = vector.extract_strided_slice %359 {offsets = [0, 64], sizes = [2, 32], strides = [1, 1]} : vector<2x128xf32> to vector<2x32xf32>
    %371 = vector.extract_strided_slice %359 {offsets = [0, 96], sizes = [2, 32], strides = [1, 1]} : vector<2x128xf32> to vector<2x32xf32>
    %cst_111 = arith.constant 5.000000e-01 : f32
    %372 = vector.broadcast %cst_111 : f32 to vector<2x32xf32>
    %373 = arith.mulf %372, %371 : vector<2x32xf32>
    %cst_112 = arith.constant 5.000000e-01 : f32
    %374 = vector.broadcast %cst_112 : f32 to vector<2x32xf32>
    %375 = arith.addf %373, %374 : vector<2x32xf32>
    %376 = arith.mulf %369, %352 : vector<2x32xf32>
    %377 = arith.mulf %364, %370 : vector<2x32xf32>
    %378 = arith.addf %376, %377 : vector<2x32xf32>
    %379 = math.tanh %378 : vector<2x32xf32>
    %380 = arith.mulf %375, %379 : vector<2x32xf32>
    %381 = vector.extract_strided_slice %13 {offsets = [28, 0], sizes = [2, 128], strides = [1, 1]} : vector<32x128xf32> to vector<2x128xf32>
    %382 = arith.truncf %380 : vector<2x32xf32> to vector<2x32xbf16>
    %cst_113 = arith.constant dense<0.000000e+00> : vector<2x128xf32>
    %383 = tpu.matmul %382, %14, %cst_113 {dimension_numbers = #tpu.dot_dimension_numbers<[1], [0], [0], [1], [0, 0, 1, 1], [], []>} : vector<2x32xbf16>, vector<32x128xbf16>, vector<2x128xf32> -> vector<2x128xf32>
    %384 = arith.addf %381, %383 : vector<2x128xf32>
    %385 = math.tanh %384 : vector<2x128xf32>
    %386 = vector.extract_strided_slice %385 {offsets = [0, 0], sizes = [2, 32], strides = [1, 1]} : vector<2x128xf32> to vector<2x32xf32>
    %cst_114 = arith.constant 5.000000e-01 : f32
    %387 = vector.broadcast %cst_114 : f32 to vector<2x32xf32>
    %388 = arith.mulf %387, %386 : vector<2x32xf32>
    %cst_115 = arith.constant 5.000000e-01 : f32
    %389 = vector.broadcast %cst_115 : f32 to vector<2x32xf32>
    %390 = arith.addf %388, %389 : vector<2x32xf32>
    %391 = vector.extract_strided_slice %385 {offsets = [0, 32], sizes = [2, 32], strides = [1, 1]} : vector<2x128xf32> to vector<2x32xf32>
    %cst_116 = arith.constant 5.000000e-01 : f32
    %392 = vector.broadcast %cst_116 : f32 to vector<2x32xf32>
    %393 = arith.mulf %392, %391 : vector<2x32xf32>
    %cst_117 = arith.constant 5.000000e-01 : f32
    %394 = vector.broadcast %cst_117 : f32 to vector<2x32xf32>
    %395 = arith.addf %393, %394 : vector<2x32xf32>
    %396 = vector.extract_strided_slice %385 {offsets = [0, 64], sizes = [2, 32], strides = [1, 1]} : vector<2x128xf32> to vector<2x32xf32>
    %397 = vector.extract_strided_slice %385 {offsets = [0, 96], sizes = [2, 32], strides = [1, 1]} : vector<2x128xf32> to vector<2x32xf32>
    %cst_118 = arith.constant 5.000000e-01 : f32
    %398 = vector.broadcast %cst_118 : f32 to vector<2x32xf32>
    %399 = arith.mulf %398, %397 : vector<2x32xf32>
    %cst_119 = arith.constant 5.000000e-01 : f32
    %400 = vector.broadcast %cst_119 : f32 to vector<2x32xf32>
    %401 = arith.addf %399, %400 : vector<2x32xf32>
    %402 = arith.mulf %395, %378 : vector<2x32xf32>
    %403 = arith.mulf %390, %396 : vector<2x32xf32>
    %404 = arith.addf %402, %403 : vector<2x32xf32>
    %405 = math.tanh %404 : vector<2x32xf32>
    %406 = arith.mulf %401, %405 : vector<2x32xf32>
    %407 = vector.extract_strided_slice %13 {offsets = [30, 0], sizes = [2, 128], strides = [1, 1]} : vector<32x128xf32> to vector<2x128xf32>
    %408 = arith.truncf %406 : vector<2x32xf32> to vector<2x32xbf16>
    %cst_120 = arith.constant dense<0.000000e+00> : vector<2x128xf32>
    %409 = tpu.matmul %408, %14, %cst_120 {dimension_numbers = #tpu.dot_dimension_numbers<[1], [0], [0], [1], [0, 0, 1, 1], [], []>} : vector<2x32xbf16>, vector<32x128xbf16>, vector<2x128xf32> -> vector<2x128xf32>
    %410 = arith.addf %407, %409 : vector<2x128xf32>
    %411 = math.tanh %410 : vector<2x128xf32>
    %412 = vector.extract_strided_slice %411 {offsets = [0, 0], sizes = [2, 32], strides = [1, 1]} : vector<2x128xf32> to vector<2x32xf32>
    %cst_121 = arith.constant 5.000000e-01 : f32
    %413 = vector.broadcast %cst_121 : f32 to vector<2x32xf32>
    %414 = arith.mulf %413, %412 : vector<2x32xf32>
    %cst_122 = arith.constant 5.000000e-01 : f32
    %415 = vector.broadcast %cst_122 : f32 to vector<2x32xf32>
    %416 = arith.addf %414, %415 : vector<2x32xf32>
    %417 = vector.extract_strided_slice %411 {offsets = [0, 32], sizes = [2, 32], strides = [1, 1]} : vector<2x128xf32> to vector<2x32xf32>
    %cst_123 = arith.constant 5.000000e-01 : f32
    %418 = vector.broadcast %cst_123 : f32 to vector<2x32xf32>
    %419 = arith.mulf %418, %417 : vector<2x32xf32>
    %cst_124 = arith.constant 5.000000e-01 : f32
    %420 = vector.broadcast %cst_124 : f32 to vector<2x32xf32>
    %421 = arith.addf %419, %420 : vector<2x32xf32>
    %422 = vector.extract_strided_slice %411 {offsets = [0, 64], sizes = [2, 32], strides = [1, 1]} : vector<2x128xf32> to vector<2x32xf32>
    %423 = vector.extract_strided_slice %411 {offsets = [0, 96], sizes = [2, 32], strides = [1, 1]} : vector<2x128xf32> to vector<2x32xf32>
    %cst_125 = arith.constant 5.000000e-01 : f32
    %424 = vector.broadcast %cst_125 : f32 to vector<2x32xf32>
    %425 = arith.mulf %424, %423 : vector<2x32xf32>
    %cst_126 = arith.constant 5.000000e-01 : f32
    %426 = vector.broadcast %cst_126 : f32 to vector<2x32xf32>
    %427 = arith.addf %425, %426 : vector<2x32xf32>
    %428 = arith.mulf %421, %404 : vector<2x32xf32>
    %429 = arith.mulf %416, %422 : vector<2x32xf32>
    %430 = arith.addf %428, %429 : vector<2x32xf32>
    %431 = math.tanh %430 : vector<2x32xf32>
    %432 = arith.mulf %427, %431 : vector<2x32xf32>
    %433 = arith.truncf %432 : vector<2x32xf32> to vector<2x32xbf16>
    %c0_127 = arith.constant 0 : index
    %c0_128 = arith.constant 0 : index
    %434 = vector.load %arg6[%c0_127, %c0_128] : memref<32x4xbf16, #tpu.memory_space<vmem>>, vector<32x4xbf16>
    %cst_129 = arith.constant dense<0.000000e+00> : vector<2x4xf32>
    %435 = tpu.matmul %433, %434, %cst_129 {dimension_numbers = #tpu.dot_dimension_numbers<[1], [0], [0], [1], [0, 0, 1, 1], [], []>} : vector<2x32xbf16>, vector<32x4xbf16>, vector<2x4xf32> -> vector<2x4xf32>
    %c0_130 = arith.constant 0 : index
    %c0_131 = arith.constant 0 : index
    %436 = vector.load %arg7[%c0_130, %c0_131] : memref<1x4xf32, #tpu.memory_space<vmem>>, vector<1x4xf32>
    %437 = vector.broadcast %436 : vector<1x4xf32> to vector<2x4xf32>
    %438 = arith.addf %435, %437 : vector<2x4xf32>
    %c0_132 = arith.constant 0 : index
    %c0_133 = arith.constant 0 : index
    %439 = vector.load %arg8[%c0_132, %c0_133] : memref<2x4xf32, #tpu.memory_space<vmem>>, vector<2x4xf32>
    tpu.vector_store %arg8[%c0_132, %c0_133], %438 {strides = array<i32>} : memref<2x4xf32, #tpu.memory_space<vmem>>, vector<2x4xf32>,
    return
  }
}

</mosaic_0001>

<bundles_post_ra>
// kernel: cnn_feed_lstm_forward.1
= control target key start
LH: loop header
LB: loop body
LE: loop exit
PB: predicated region body
PF: predicated region fallthrough
CT: control target
= control target key end

     0   :  { %vm63_vm0 = vcmask 1045504   ;;  %s1372_s0 = inlined_call_operand.vmem [shape: bf16[32,12], index: 0, kind: input, shape index: {}]   ;;  %s1373_s1 = inlined_call_operand.vmem [shape: bf16[12,32], index: 1, kind: input, shape index: {}]   ;;  %s1374_s2 = inlined_call_operand.vmem [shape: f32[1,32], index: 2, kind: input, shape index: {}]   ;;  %s1375_s3 = inlined_call_operand.vmem [shape: bf16[32,128], index: 3, kind: input, shape index: {}]   ;;  %s1376_s4 = inlined_call_operand.vmem [shape: bf16[32,128], index: 4, kind: input, shape index: {}]   ;;  %s1377_s5 = inlined_call_operand.vmem [shape: f32[1,128], index: 5, kind: input, shape index: {}]   ;;  %s1378_s6 = inlined_call_operand.vmem [shape: bf16[32,4], index: 6, kind: input, shape index: {}]   ;;  %s1379_s7 = inlined_call_operand.vmem [shape: f32[1,4], index: 7, kind: input, shape index: {}]   ;;  %s1380_s8 = inlined_call_operand.hbm [shape: f32[2,4], index: 8, kind: output, shape index: {}]  }
   0x1   :  { %v967_v0 = vld [vmem:[%s1373_s1] sm:$0xf]  ;;  %v1015_v1 = vld [vmem:[%s1373_s1] sm:$0x30]  ;;  %v1177_v3 = vld [vmem:[%s1376_s4 + $0x8] sm:$0xff] }
   0x2   :  { %v968_v2 = vor.u32 %v1015_v1, %v967_v0 }
   0x3   :  { %13 = vsyncpa [#allocation3], 0  ;;  %v1013_v5 = vld [vmem:[%s1372_s0] sm:$0xff]  ;;  %163 = vmatpush.bf16.msra.mxu2 %v1177_v3  ;;  %204 = vmatpush.bf16.msra.mxu3 %v1177_v3  ;;  %vm56_vm1 = vcmask 97280   ;;  %v1119_v7 = vmov 0   ;;  %v1017_v8 = vld [vmem:[%s1375_s3 + $0x8] sm:$0xff] }
   0x4   :  { %v65_v4 = vsel %vm63_vm0, %v968_v2, 0  ;;  %v1189_v6 = vld [vmem:[%s1376_s4] sm:$0xff]  ;;  %125 = vmatpush.bf16.msra.mxu1 %v1017_v8  ;;  %vm112_vm2 = vcmask 261120   ;;  %s1120_s19 = smov 64   ;;  %s1121_s20 = smov 32   ;;  %vm939_vm3 = vcmask 25600  }
   0x5   :  { %74 = vmatpush.bf16.msra.mxu0 %v65_v4  ;;  %v1016_v9 = vld [vmem:[%s1375_s3] sm:$0xff]  ;;  %s1122_s27 = smov [#allocation2]  }
   0x6   :  { %v1213_v11 = vld [vmem:[%s1374_s2] ss:$0 sm:$0xff]  ;;  %s946_s28 = sshll.u32 %s1122_s27, 4  ;;  %s947_s28 = int_to_ptr.vmem [resolvable:$true] %s946_s28 }
   0x7   :  { %164 = vmatpush.bf16.msra.mxu2 %v1189_v6  ;;  %205 = vmatpush.bf16.msra.mxu3 %v1189_v6  ;;  %v1223_v20 = vld [vmem:[%s1377_s5] ss:$0 sm:$0xff] }
   0x8   :  { %969 = vmatmul.msk.bf16.vlgmr.msra.gmra.mxu0 %vm56_vm1, %v1013_v5  ;;  %126 = vmatpush.bf16.msra.mxu1 %v1016_v9 }
   0x9   :  { %348 = vmatpush.bf16.msrb.mxu0 %v1177_v3 }
   0xa   :  { %165 = vmatmul.bf16.vlgmr.msra.gmra.mxu2 %v1119_v7 }
   0xb   :  { %252 = vmatpush.bf16.msrb.mxu2 %v1177_v3  ;;  %300 = vmatpush.bf16.msrb.mxu3 %v1177_v3 }
   0xc   :  { %392 = vmatpush.bf16.msrb.mxu1 %v1177_v3 }
   0xd   :  { %349 = vmatpush.bf16.msrb.mxu0 %v1189_v6 }
   0xf   :  { %253 = vmatpush.bf16.msrb.mxu2 %v1189_v6  ;;  %301 = vmatpush.bf16.msrb.mxu3 %v1189_v6 }
  0x10   :  { %393 = vmatpush.bf16.msrb.mxu1 %v1189_v6 }
  0x11   :  { %536 = vmatpush.bf16.msra.mxu0 %v1177_v3 }
  0x13   :  { %440 = vmatpush.bf16.msra.mxu2 %v1177_v3 }
  0x15   :  { %537 = vmatpush.bf16.msra.mxu0 %v1189_v6 }
  0x17   :  { %441 = vmatpush.bf16.msra.mxu2 %v1189_v6 }
  0x85   :  { %v76_v10 = vpop.f32.mrf.mxu0 }
  0x86   :  { %v77_v12 = vadd.f32 %v1213_v11, %v76_v10 }
  0x88   :  { %v86_v15 = vmax.f32 %v77_v12, 0.0 }
  0x8d   :  { %v78_v13 = vpop.f32.mrf.mxu0  ;;  %v166_v18 = vpop.f32.mrf.mxu2 }
  0x8e   :  { %v79_v14 = vadd.f32 %v1213_v11, %v78_v13 }
  0x90   :  { %v87_v16 = vmax.f32 %v79_v14, 0.0 }
  0x92   :  { %v90_v17 = vpack.c.bf16 %v87_v16, %v86_v15 }
  0x94   :  { %979 = vmatmul.msk.bf16.vlgmr.msra.gmra.mxu1 %vm112_vm2, %v90_v17 }
  0x95   :  { %580 = vmatpush.bf16.msra.mxu1 %v1177_v3  ;;  %v168_v19 = vpop.f32.mrf.mxu2 }
  0x99   :  { %581 = vmatpush.bf16.msra.mxu1 %v1189_v6 }
 0x111   :  { %v128_v21 = vpop.f32.mrf.mxu1 }
 0x112   :  { %v1226_v22 = vadd.f32 %v1223_v20, %v128_v21 }
 0x114   :  { %v170_v23 = vadd.f32 %v166_v18, %v1226_v22 }
 0x116   :  { %1029 = vtanh.f32 %v170_v23 }
 0x11c   :  { %v1030_v24 = vpop.eup %1029 }
 0x11d   :  { %176 = vrot.lane.b32.xlu0 %v1030_v24, %s1120_s19  ;;  %v172_v25 = vmul.f32 0.5, %v1030_v24 }
 0x11f   :  { %v173_v26 = vadd.f32 0.5, %v172_v25 }
 0x121   :  { %v174_v29 = vmul.f32 0.0, %v173_v26 }
 0x18f   :  { %v177_v27 = vpop.permute.xlu0 %176 }
 0x190   :  { %v179_v28 = vmul.f32 %v177_v27, %v173_v26 }
 0x192   :  { %181 = vrot.lane.b32.xlu0 %v179_v28, %s1121_s20 }
 0x204   :  { %v182_v30 = vpop.permute.xlu0 %181 }
 0x205   :  { %v184_v31 = vadd.f32 %v182_v30, %v174_v29 }
 0x207   :  { %1031 = vtanh.f32 %v184_v31  ;;  %v219_v46 = vrot.slane %v184_v31, 6 }
 0x20d   :  { %v1032_v32 = vpop.eup %1031 }
 0x20e   :  { %187 = vrot.lane.b32.xlu1 %v1032_v32, %s1120_s19 }
 0x280   :  { %v188_v33 = vpop.permute.xlu1 %187 }
 0x281   :  { %v190_v34 = vmul.f32 %v188_v33, %v173_v26 }
 0x283   :  { %v191_v35 = vpack.c.bf16 %v190_v34, %v190_v34 }
 0x285   :  { %193 = vrot.lane.b32.xlu1 %v191_v35, %s1121_s20 }
 0x2f7   :  { %v194_v36 = vpop.permute.xlu1 %193 }
 0x2f8   :  { %989 = vmatmul.msk.bf16.vlgmr.msra.gmra.mxu3 %vm112_vm2, %v194_v36 }
 0x2f9   :  { %488 = vmatpush.bf16.msra.mxu3 %v1177_v3 }
 0x2fd   :  { %489 = vmatpush.bf16.msra.mxu3 %v1189_v6 }
 0x37b   :  { %v207_v37 = vpop.f32.mrf.mxu3 }
 0x37c   :  { %v212_v38 = vrot.slane %v207_v37, 6 }
 0x37e   :  { %v214_v39 = vadd.f32 %v212_v38, %v1226_v22 }
 0x380   :  { %1033 = vtanh.f32 %v214_v39 }
 0x383   :  { %v209_v40 = vpop.f32.mrf.mxu3 }
 0x386   :  { %v1034_v41 = vpop.eup %1033 }
 0x387   :  { %223 = vrot.lane.b32.xlu2 %v1034_v41, %s1120_s19  ;;  %v216_v42 = vmul.f32 0.5, %v1034_v41 }
 0x389   :  { %v217_v43 = vadd.f32 0.5, %v216_v42  ;;  %v130_v42 = vpop.f32.mrf.mxu1 }
 0x38b   :  { %v221_v47 = vmul.f32 %v219_v46, %v217_v43 }
 0x3e1   :  { %v224_v44 = vpop.permute.xlu2 %223 }
 0x3e2   :  { %v226_v45 = vmul.f32 %v224_v44, %v217_v43 }
 0x3e4   :  { %228 = vrot.lane.b32.xlu2 %v226_v45, %s1121_s20 }
 0x43e   :  { %v229_v48 = vpop.permute.xlu2 %228 }
 0x43f   :  { %v231_v49 = vadd.f32 %v229_v48, %v221_v47 }
 0x441   :  { %1035 = vtanh.f32 %v231_v49  ;;  %v267_v1 = vrot.slane %v231_v49, 6 }
 0x447   :  { %v1036_v50 = vpop.eup %1035 }
 0x448   :  { %234 = vrot.lane.b32.xlu0 %v1036_v50, %s1120_s19 }
 0x4ba   :  { %v235_v51 = vpop.permute.xlu0 %234 }
 0x4bb   :  { %v237_v52 = vmul.f32 %v235_v51, %v217_v43  ;;  %v1268_v43 = vadd.f32 %v1223_v20, %v130_v42 }
 0x4bd   :  { %v238_v53 = vpack.c.bf16 %v237_v52, %v237_v52 }
 0x4bf   :  { %v240_v54 = vrot.slane %v238_v53, 1 }
 0x4c1   :  { %241 = vrot.lane.b32.xlu1 %v240_v54, %s1121_s20 }
 0x533   :  { %v242_v55 = vpop.permute.xlu1 %241 }
 0x534   :  { %990 = vmatmul.msk.bf16.vlgmr.msrb.gmra.mxu2 %vm112_vm2, %v242_v55 }
 0x535   :  { %628 = vmatpush.bf16.msrb.mxu2 %v1177_v3 }
 0x539   :  { %629 = vmatpush.bf16.msrb.mxu2 %v1189_v6 }
 0x5b7   :  { %v255_v56 = vpop.f32.mrf.mxu2 }
 0x5b8   :  { %v260_v57 = vrot.slane %v255_v56, 4 }
 0x5ba   :  { %v262_v58 = vadd.f32 %v260_v57, %v1226_v22 }
 0x5bc   :  { %1037 = vtanh.f32 %v262_v58 }
 0x5bf   :  { %v257_v59 = vpop.f32.mrf.mxu2 }
 0x5c2   :  { %v1038_v60 = vpop.eup %1037 }
 0x5c3   :  { %271 = vrot.lane.b32.xlu2 %v1038_v60, %s1120_s19  ;;  %v264_v61 = vmul.f32 0.5, %v1038_v60 }
 0x5c5   :  { %v265_v62 = vadd.f32 0.5, %v264_v61 }
 0x5c7   :  { %v269_v2 = vmul.f32 %v267_v1, %v265_v62 }
 0x61d   :  { %v272_v63 = vpop.permute.xlu2 %271 }
 0x61e   :  { %v274_v0 = vmul.f32 %v272_v63, %v265_v62 }
 0x620   :  { %276 = vrot.lane.b32.xlu0 %v274_v0, %s1121_s20 }
 0x692   :  { %v277_v4 = vpop.permute.xlu0 %276 }
 0x693   :  { %v279_v5 = vadd.f32 %v277_v4, %v269_v2 }
 0x695   :  { %1039 = vtanh.f32 %v279_v5  ;;  %v315_v25 = vrot.slane %v279_v5, 6 }
 0x69b   :  { %v1040_v7 = vpop.eup %1039 }
 0x69c   :  { %282 = vrot.lane.b32.xlu1 %v1040_v7, %s1120_s19 }
 0x70e   :  { %v283_v8 = vpop.permute.xlu1 %282 }
 0x70f   :  { %v285_v9 = vmul.f32 %v283_v8, %v265_v62 }
 0x711   :  { %v286_v10 = vpack.c.bf16 %v285_v9, %v285_v9 }
 0x713   :  { %v288_v12 = vrot.slane %v286_v10, 2 }
 0x715   :  { %289 = vrot.lane.b32.xlu2 %v288_v12, %s1121_s20 }
 0x76f   :  { %v290_v13 = vpop.permute.xlu2 %289 }
 0x770   :  { %991 = vmatmul.msk.bf16.vlgmr.msrb.gmra.mxu3 %vm112_vm2, %v290_v13 }
 0x771   :  { %676 = vmatpush.bf16.msrb.mxu3 %v1177_v3 }
 0x775   :  { %677 = vmatpush.bf16.msrb.mxu3 %v1189_v6 }
 0x7f3   :  { %v303_v14 = vpop.f32.mrf.mxu3 }
 0x7f4   :  { %v308_v15 = vrot.slane %v303_v14, 2 }
 0x7f6   :  { %v310_v16 = vadd.f32 %v308_v15, %v1226_v22  ;;  %v1014_v22 = vld [vmem:[%s1372_s0 + $0x8] sm:$0xff] }
 0x7f7   :  { %970 = vmatmul.msk.bf16.gmra.mxu0 %vm56_vm1, %v1014_v22 }
 0x7f8   :  { %1041 = vtanh.f32 %v310_v16 }
 0x7fb   :  { %v305_v17 = vpop.f32.mrf.mxu3 }
 0x7fe   :  { %v1042_v18 = vpop.eup %1041 }
 0x7ff   :  { %319 = vrot.lane.b32.xlu0 %v1042_v18, %s1120_s19  ;;  %v312_v19 = vmul.f32 0.5, %v1042_v18 }
 0x801   :  { %v313_v21 = vadd.f32 0.5, %v312_v19 }
 0x803   :  { %v317_v26 = vmul.f32 %v315_v25, %v313_v21 }
 0x871   :  { %v320_v23 = vpop.permute.xlu0 %319 }
 0x872   :  { %v322_v24 = vmul.f32 %v320_v23, %v313_v21 }
 0x874   :  { %324 = vrot.lane.b32.xlu1 %v322_v24, %s1121_s20  ;;  %v81_v34 = vpop.f32.mrf.mxu0 }
 0x875   :  { %v82_v35 = vadd.f32 %v1213_v11, %v81_v34 }
 0x877   :  { %v88_v37 = vmax.f32 %v82_v35, 0.0 }
 0x87c   :  { %v83_v36 = vpop.f32.mrf.mxu0 }
 0x87d   :  { %v84_v38 = vadd.f32 %v1213_v11, %v83_v36 }
 0x87f   :  { %v89_v39 = vmax.f32 %v84_v38, 0.0 }
 0x881   :  { %v91_v40 = vpack.c.bf16 %v89_v39, %v88_v37 }
 0x883   :  { %980 = vmatmul.msk.bf16.gmra.mxu1 %vm112_vm2, %v91_v40 }
 0x8e6   :  { %v325_v27 = vpop.permute.xlu1 %324 }
 0x8e7   :  { %v327_v28 = vadd.f32 %v325_v27, %v317_v26 }
 0x8e9   :  { %1043 = vtanh.f32 %v327_v28  ;;  %v360_v51 = vrot.slane %v327_v28, 6 }
 0x8ef   :  { %v1044_v29 = vpop.eup %1043 }
 0x8f0   :  { %330 = vrot.lane.b32.xlu2 %v1044_v29, %s1120_s19 }
 0x900   :  { %v1278_v60 = vpop.f32.mrf.mxu1 }
 0x908   :  { %v1280_v61 = vpop.f32.mrf.mxu1 }
 0x94a   :  { %v331_v30 = vpop.permute.xlu2 %330 }
 0x94b   :  { %v333_v31 = vmul.f32 %v331_v30, %v313_v21 }
 0x94d   :  { %v334_v32 = vpack.c.bf16 %v333_v31, %v333_v31 }
 0x94f   :  { %v336_v33 = vrot.slane %v334_v32, 3 }
 0x951   :  { %337 = vrot.lane.b32.xlu0 %v336_v33, %s1121_s20 }
 0x9c3   :  { %v338_v41 = vpop.permute.xlu0 %337 }
 0x9c4   :  { %992 = vmatmul.msk.bf16.vlgmr.msrb.gmra.mxu0 %vm112_vm2, %v338_v41 }
 0x9c5   :  { %724 = vmatpush.bf16.msrb.mxu0 %v1177_v3 }
 0x9c9   :  { %725 = vmatpush.bf16.msrb.mxu0 %v1189_v6 }
 0xa41   :  { %v351_v44 = vpop.f32.mrf.mxu0 }
 0xa42   :  { %v355_v45 = vadd.f32 %v351_v44, %v1268_v43 }
 0xa44   :  { %1045 = vtanh.f32 %v355_v45 }
 0xa49   :  { %v353_v11 = vpop.f32.mrf.mxu0 }
 0xa4a   :  { %v1046_v46 = vpop.eup %1045 }
 0xa4b   :  { %364 = vrot.lane.b32.xlu1 %v1046_v46, %s1120_s19  ;;  %v357_v47 = vmul.f32 0.5, %v1046_v46 }
 0xa4d   :  { %v358_v48 = vadd.f32 0.5, %v357_v47 }
 0xa4f   :  { %v362_v52 = vmul.f32 %v360_v51, %v358_v48 }
 0xabd   :  { %v365_v49 = vpop.permute.xlu1 %364 }
 0xabe   :  { %v367_v50 = vmul.f32 %v365_v49, %v358_v48 }
 0xac0   :  { %369 = vrot.lane.b32.xlu2 %v367_v50, %s1121_s20 }
 0xb1a   :  { %v370_v53 = vpop.permute.xlu2 %369 }
 0xb1b   :  { %v372_v54 = vadd.f32 %v370_v53, %v362_v52 }
 0xb1d   :  { %1047 = vtanh.f32 %v372_v54  ;;  %v407_v9 = vrot.slane %v372_v54, 6 }
 0xb23   :  { %v1048_v55 = vpop.eup %1047 }
 0xb24   :  { %375 = vrot.lane.b32.xlu0 %v1048_v55, %s1120_s19 }
 0xb96   :  { %v376_v56 = vpop.permute.xlu0 %375 }
 0xb97   :  { %v378_v57 = vmul.f32 %v376_v56, %v358_v48  ;;  %v1306_v56 = vadd.f32 %v1223_v20, %v1278_v60 }
 0xb99   :  { %v379_v58 = vpack.c.bf16 %v378_v57, %v378_v57 }
 0xb9b   :  { %381 = vrot.lane.b32.xlu1 %v379_v58, %s1121_s20 }
 0xc0d   :  { %v382_v59 = vpop.permute.xlu1 %381 }
 0xc0e   :  { %993 = vmatmul.msk.bf16.vlgmr.msrb.gmra.mxu1 %vm112_vm2, %v382_v59 }
 0xc0f   :  { %768 = vmatpush.bf16.msrb.mxu1 %v1177_v3 }
 0xc13   :  { %769 = vmatpush.bf16.msrb.mxu1 %v1189_v6 }
 0xc8b   :  { %v395_v62 = vpop.f32.mrf.mxu1 }
 0xc8c   :  { %v400_v63 = vrot.slane %v395_v62, 6 }
 0xc8e   :  { %v402_v0 = vadd.f32 %v400_v63, %v1268_v43 }
 0xc90   :  { %1049 = vtanh.f32 %v402_v0 }
 0xc93   :  { %v397_v1 = vpop.f32.mrf.mxu1 }
 0xc96   :  { %v1050_v2 = vpop.eup %1049 }
 0xc97   :  { %411 = vrot.lane.b32.xlu2 %v1050_v2, %s1120_s19  ;;  %v404_v4 = vmul.f32 0.5, %v1050_v2 }
 0xc99   :  { %v405_v5 = vadd.f32 0.5, %v404_v4 }
 0xc9b   :  { %v409_v10 = vmul.f32 %v407_v9, %v405_v5 }
 0xcf1   :  { %v412_v7 = vpop.permute.xlu2 %411 }
 0xcf2   :  { %v414_v8 = vmul.f32 %v412_v7, %v405_v5 }
 0xcf4   :  { %416 = vrot.lane.b32.xlu0 %v414_v8, %s1121_s20 }
 0xd66   :  { %v417_v12 = vpop.permute.xlu0 %416 }
 0xd67   :  { %v419_v13 = vadd.f32 %v417_v12, %v409_v10 }
 0xd69   :  { %1051 = vtanh.f32 %v419_v13  ;;  %v455_v30 = vrot.slane %v419_v13, 6 }
 0xd6f   :  { %v1052_v14 = vpop.eup %1051 }
 0xd70   :  { %422 = vrot.lane.b32.xlu1 %v1052_v14, %s1120_s19 }
 0xde2   :  { %v423_v15 = vpop.permute.xlu1 %422 }
 0xde3   :  { %v425_v16 = vmul.f32 %v423_v15, %v405_v5 }
 0xde5   :  { %v426_v17 = vpack.c.bf16 %v425_v16, %v425_v16 }
 0xde7   :  { %v428_v18 = vrot.slane %v426_v17, 1 }
 0xde9   :  { %429 = vrot.lane.b32.xlu2 %v428_v18, %s1121_s20 }
 0xe43   :  { %v430_v19 = vpop.permute.xlu2 %429 }
 0xe44   :  { %994 = vmatmul.msk.bf16.vlgmr.msra.gmra.mxu2 %vm112_vm2, %v430_v19 }
 0xe45   :  { %816 = vmatpush.bf16.msra.mxu2 %v1177_v3 }
 0xe49   :  { %817 = vmatpush.bf16.msra.mxu2 %v1189_v6 }
 0xec7   :  { %v443_v21 = vpop.f32.mrf.mxu2 }
 0xec8   :  { %v448_v23 = vrot.slane %v443_v21, 4 }
 0xeca   :  { %v450_v24 = vadd.f32 %v448_v23, %v1268_v43 }
 0xecc   :  { %1053 = vtanh.f32 %v450_v24 }
 0xecf   :  { %v445_v25 = vpop.f32.mrf.mxu2 }
 0xed2   :  { %v1054_v26 = vpop.eup %1053 }
 0xed3   :  { %459 = vrot.lane.b32.xlu0 %v1054_v26, %s1120_s19  ;;  %v452_v27 = vmul.f32 0.5, %v1054_v26 }
 0xed5   :  { %v453_v28 = vadd.f32 0.5, %v452_v27 }
 0xed7   :  { %v457_v31 = vmul.f32 %v455_v30, %v453_v28 }
 0xf45   :  { %v460_v29 = vpop.permute.xlu0 %459 }
 0xf46   :  { %v462_v22 = vmul.f32 %v460_v29, %v453_v28 }
 0xf48   :  { %464 = vrot.lane.b32.xlu1 %v462_v22, %s1121_s20 }
 0xfba   :  { %v465_v32 = vpop.permute.xlu1 %464 }
 0xfbb   :  { %v467_v33 = vadd.f32 %v465_v32, %v457_v31 }
 0xfbd   :  { %1055 = vtanh.f32 %v467_v33  ;;  %v503_v49 = vrot.slane %v467_v33, 6 }
 0xfc3   :  { %v1056_v34 = vpop.eup %1055 }
 0xfc4   :  { %470 = vrot.lane.b32.xlu2 %v1056_v34, %s1120_s19 }
0x101e   :  { %v471_v35 = vpop.permute.xlu2 %470 }
0x101f   :  { %v473_v36 = vmul.f32 %v471_v35, %v453_v28 }
0x1021   :  { %v474_v37 = vpack.c.bf16 %v473_v36, %v473_v36 }
0x1023   :  { %v476_v38 = vrot.slane %v474_v37, 2 }
0x1025   :  { %477 = vrot.lane.b32.xlu0 %v476_v38, %s1121_s20 }
0x1097   :  { %v478_v39 = vpop.permute.xlu0 %477 }
0x1098   :  { %995 = vmatmul.msk.bf16.vlgmr.msra.gmra.mxu3 %vm112_vm2, %v478_v39 }
0x1099   :  { %864 = vmatpush.bf16.msra.mxu3 %v1177_v3 }
0x109d   :  { %865 = vmatpush.bf16.msra.mxu3 %v1189_v6 }
0x111b   :  { %v491_v40 = vpop.f32.mrf.mxu3 }
0x111c   :  { %v496_v41 = vrot.slane %v491_v40, 2 }
0x111e   :  { %v498_v42 = vadd.f32 %v496_v41, %v1268_v43 }
0x1120   :  { %1057 = vtanh.f32 %v498_v42 }
0x1123   :  { %v493_v44 = vpop.f32.mrf.mxu3 }
0x1126   :  { %v1058_v45 = vpop.eup %1057 }
0x1127   :  { %507 = vrot.lane.b32.xlu1 %v1058_v45, %s1120_s19  ;;  %v500_v11 = vmul.f32 0.5, %v1058_v45 }
0x1129   :  { %v501_v46 = vadd.f32 0.5, %v500_v11 }
0x112b   :  { %v505_v50 = vmul.f32 %v503_v49, %v501_v46 }
0x1199   :  { %v508_v47 = vpop.permute.xlu1 %507 }
0x119a   :  { %v510_v48 = vmul.f32 %v508_v47, %v501_v46 }
0x119c   :  { %512 = vrot.lane.b32.xlu2 %v510_v48, %s1121_s20 }
0x11f6   :  { %v513_v3 = vpop.permute.xlu2 %512 }
0x11f7   :  { %v515_v51 = vadd.f32 %v513_v3, %v505_v50 }
0x11f9   :  { %1059 = vtanh.f32 %v515_v51  ;;  %v548_v4 = vrot.slane %v515_v51, 6 }
0x11ff   :  { %v1060_v6 = vpop.eup %1059 }
0x1200   :  { %518 = vrot.lane.b32.xlu0 %v1060_v6, %s1120_s19 }
0x1272   :  { %v519_v43 = vpop.permute.xlu0 %518 }
0x1273   :  { %v521_v52 = vmul.f32 %v519_v43, %v501_v46 }
0x1275   :  { %v522_v53 = vpack.c.bf16 %v521_v52, %v521_v52 }
0x1277   :  { %v524_v54 = vrot.slane %v522_v53, 3 }
0x1279   :  { %525 = vrot.lane.b32.xlu1 %v524_v54, %s1121_s20 }
0x12eb   :  { %v526_v55 = vpop.permute.xlu1 %525 }
0x12ec   :  { %996 = vmatmul.msk.bf16.vlgmr.msra.gmra.mxu0 %vm112_vm2, %v526_v55 }
0x1369   :  { %v539_v57 = vpop.f32.mrf.mxu0 }
0x136a   :  { %v543_v58 = vadd.f32 %v539_v57, %v1306_v56 }
0x136c   :  { %1061 = vtanh.f32 %v543_v58 }
0x1371   :  { %v541_v59 = vpop.f32.mrf.mxu0 }
0x1372   :  { %v1062_v62 = vpop.eup %1061 }
0x1373   :  { %552 = vrot.lane.b32.xlu2 %v1062_v62, %s1120_s19  ;;  %v545_v63 = vmul.f32 0.5, %v1062_v62 }
0x1375   :  { %v546_v0 = vadd.f32 0.5, %v545_v63 }
0x1377   :  { %v550_v5 = vmul.f32 %v548_v4, %v546_v0 }
0x13cd   :  { %v553_v1 = vpop.permute.xlu2 %552 }
0x13ce   :  { %v555_v2 = vmul.f32 %v553_v1, %v546_v0 }
0x13d0   :  { %557 = vrot.lane.b32.xlu0 %v555_v2, %s1121_s20 }
0x1442   :  { %v558_v7 = vpop.permute.xlu0 %557 }
0x1443   :  { %v560_v8 = vadd.f32 %v558_v7, %v550_v5 }
0x1445   :  { %1063 = vtanh.f32 %v560_v8  ;;  %v595_v25 = vrot.slane %v560_v8, 6 }
0x144b   :  { %v1064_v60 = vpop.eup %1063 }
0x144c   :  { %563 = vrot.lane.b32.xlu1 %v1064_v60, %s1120_s19  ;;  %v1334_v60 = vadd.f32 %v1223_v20, %v1280_v61 }
0x14be   :  { %v564_v9 = vpop.permute.xlu1 %563 }
0x14bf   :  { %v566_v10 = vmul.f32 %v564_v9, %v546_v0 }
0x14c1   :  { %v567_v12 = vpack.c.bf16 %v566_v10, %v566_v10 }
0x14c3   :  { %569 = vrot.lane.b32.xlu2 %v567_v12, %s1121_s20 }
0x151d   :  { %v570_v13 = vpop.permute.xlu2 %569 }
0x151e   :  { %997 = vmatmul.msk.bf16.vlgmr.msra.gmra.mxu1 %vm112_vm2, %v570_v13 }
0x159b   :  { %v583_v14 = vpop.f32.mrf.mxu1 }
0x159c   :  { %v588_v15 = vrot.slane %v583_v14, 6 }
0x159e   :  { %v590_v16 = vadd.f32 %v588_v15, %v1306_v56 }
0x15a0   :  { %1065 = vtanh.f32 %v590_v16 }
0x15a3   :  { %v585_v17 = vpop.f32.mrf.mxu1 }
0x15a6   :  { %v1066_v18 = vpop.eup %1065 }
0x15a7   :  { %599 = vrot.lane.b32.xlu0 %v1066_v18, %s1120_s19  ;;  %v592_v19 = vmul.f32 0.5, %v1066_v18 }
0x15a9   :  { %v593_v21 = vadd.f32 0.5, %v592_v19 }
0x15ab   :  { %v597_v26 = vmul.f32 %v595_v25, %v593_v21 }
0x1619   :  { %v600_v23 = vpop.permute.xlu0 %599 }
0x161a   :  { %v602_v24 = vmul.f32 %v600_v23, %v593_v21 }
0x161c   :  { %604 = vrot.lane.b32.xlu1 %v602_v24, %s1121_s20 }
0x168e   :  { %v605_v27 = vpop.permute.xlu1 %604 }
0x168f   :  { %v607_v28 = vadd.f32 %v605_v27, %v597_v26 }
0x1691   :  { %1067 = vtanh.f32 %v607_v28  ;;  %v643_v44 = vrot.slane %v607_v28, 6 }
0x1697   :  { %v1068_v29 = vpop.eup %1067 }
0x1698   :  { %610 = vrot.lane.b32.xlu2 %v1068_v29, %s1120_s19 }
0x16f2   :  { %v611_v22 = vpop.permute.xlu2 %610 }
0x16f3   :  { %v613_v30 = vmul.f32 %v611_v22, %v593_v21 }
0x16f5   :  { %v614_v31 = vpack.c.bf16 %v613_v30, %v613_v30 }
0x16f7   :  { %v616_v32 = vrot.slane %v614_v31, 1 }
0x16f9   :  { %617 = vrot.lane.b32.xlu0 %v616_v32, %s1121_s20 }
0x176b   :  { %v618_v33 = vpop.permute.xlu0 %617 }
0x176c   :  { %998 = vmatmul.msk.bf16.vlgmr.msrb.gmra.mxu2 %vm112_vm2, %v618_v33 }
0x17ef   :  { %v631_v34 = vpop.f32.mrf.mxu2 }
0x17f0   :  { %v636_v35 = vrot.slane %v631_v34, 4 }
0x17f2   :  { %v638_v36 = vadd.f32 %v636_v35, %v1306_v56 }
0x17f4   :  { %1069 = vtanh.f32 %v638_v36 }
0x17f7   :  { %v633_v37 = vpop.f32.mrf.mxu2 }
0x17fa   :  { %v1070_v38 = vpop.eup %1069 }
0x17fb   :  { %647 = vrot.lane.b32.xlu1 %v1070_v38, %s1120_s19  ;;  %v640_v39 = vmul.f32 0.5, %v1070_v38 }
0x17fd   :  { %v641_v40 = vadd.f32 0.5, %v640_v39 }
0x17ff   :  { %v645_v45 = vmul.f32 %v643_v44, %v641_v40 }
0x186d   :  { %v648_v41 = vpop.permute.xlu1 %647 }
0x186e   :  { %v650_v42 = vmul.f32 %v648_v41, %v641_v40 }
0x1870   :  { %652 = vrot.lane.b32.xlu2 %v650_v42, %s1121_s20 }
0x18ca   :  { %v653_v11 = vpop.permute.xlu2 %652 }
0x18cb   :  { %v655_v46 = vadd.f32 %v653_v11, %v645_v45 }
0x18cd   :  { %1071 = vtanh.f32 %v655_v46  ;;  %v691_v62 = vrot.slane %v655_v46, 6 }
0x18d3   :  { %v1072_v47 = vpop.eup %1071 }
0x18d4   :  { %658 = vrot.lane.b32.xlu0 %v1072_v47, %s1120_s19 }
0x1946   :  { %v659_v48 = vpop.permute.xlu0 %658 }
0x1947   :  { %v661_v49 = vmul.f32 %v659_v48, %v641_v40 }
0x1949   :  { %v662_v50 = vpack.c.bf16 %v661_v49, %v661_v49 }
0x194b   :  { %v664_v3 = vrot.slane %v662_v50, 2 }
0x194d   :  { %665 = vrot.lane.b32.xlu1 %v664_v3, %s1121_s20 }
0x19bf   :  { %v666_v51 = vpop.permute.xlu1 %665 }
0x19c0   :  { %999 = vmatmul.msk.bf16.vlgmr.msrb.gmra.mxu3 %vm112_vm2, %v666_v51 }
0x1a43   :  { %v679_v6 = vpop.f32.mrf.mxu3 }
0x1a44   :  { %v684_v43 = vrot.slane %v679_v6, 2 }
0x1a46   :  { %v686_v52 = vadd.f32 %v684_v43, %v1306_v56 }
0x1a48   :  { %1073 = vtanh.f32 %v686_v52 }
0x1a4b   :  { %v681_v53 = vpop.f32.mrf.mxu3 }
0x1a4e   :  { %v1074_v54 = vpop.eup %1073 }
0x1a4f   :  { %695 = vrot.lane.b32.xlu2 %v1074_v54, %s1120_s19  ;;  %v688_v55 = vmul.f32 0.5, %v1074_v54 }
0x1a51   :  { %v689_v57 = vadd.f32 0.5, %v688_v55 }
0x1a53   :  { %v693_v63 = vmul.f32 %v691_v62, %v689_v57 }
0x1aa9   :  { %v696_v58 = vpop.permute.xlu2 %695 }
0x1aaa   :  { %v698_v59 = vmul.f32 %v696_v58, %v689_v57 }
0x1aac   :  { %700 = vrot.lane.b32.xlu0 %v698_v59, %s1121_s20 }
0x1b1e   :  { %v701_v0 = vpop.permute.xlu0 %700 }
0x1b1f   :  { %v703_v1 = vadd.f32 %v701_v0, %v693_v63 }
0x1b21   :  { %1075 = vtanh.f32 %v703_v1  ;;  %v736_v18 = vrot.slane %v703_v1, 6 }
0x1b27   :  { %v1076_v2 = vpop.eup %1075 }
0x1b28   :  { %706 = vrot.lane.b32.xlu1 %v1076_v2, %s1120_s19 }
0x1b9a   :  { %v707_v56 = vpop.permute.xlu1 %706 }
0x1b9b   :  { %v709_v4 = vmul.f32 %v707_v56, %v689_v57 }
0x1b9d   :  { %v710_v5 = vpack.c.bf16 %v709_v4, %v709_v4 }
0x1b9f   :  { %v712_v7 = vrot.slane %v710_v5, 3 }
0x1ba1   :  { %713 = vrot.lane.b32.xlu2 %v712_v7, %s1121_s20 }
0x1bfb   :  { %v714_v8 = vpop.permute.xlu2 %713 }
0x1bfc   :  { %1000 = vmatmul.msk.bf16.vlgmr.msrb.gmra.mxu0 %vm112_vm2, %v714_v8 }
0x1c79   :  { %v727_v9 = vpop.f32.mrf.mxu0 }
0x1c7a   :  { %v731_v10 = vadd.f32 %v727_v9, %v1334_v60 }
0x1c7c   :  { %1077 = vtanh.f32 %v731_v10 }
0x1c81   :  { %v729_v12 = vpop.f32.mrf.mxu0 }
0x1c82   :  { %v1078_v13 = vpop.eup %1077 }
0x1c83   :  { %740 = vrot.lane.b32.xlu0 %v1078_v13, %s1120_s19  ;;  %v733_v14 = vmul.f32 0.5, %v1078_v13 }
0x1c85   :  { %v734_v15 = vadd.f32 0.5, %v733_v14 }
0x1c87   :  { %v738_v19 = vmul.f32 %v736_v18, %v734_v15 }
0x1cf5   :  { %v741_v16 = vpop.permute.xlu0 %740 }
0x1cf6   :  { %v743_v17 = vmul.f32 %v741_v16, %v734_v15  ;;  %v1020_v16 = vld [vmem:[%s1378_s6] sm:$0xff] }
0x1cf8   :  { %745 = vrot.lane.b32.xlu1 %v743_v17, %s1121_s20 }
0x1d6a   :  { %v746_v21 = vpop.permute.xlu1 %745 }
0x1d6b   :  { %v748_v23 = vadd.f32 %v746_v21, %v738_v19 }
0x1d6d   :  { %1079 = vtanh.f32 %v748_v23  ;;  %v783_v35 = vrot.slane %v748_v23, 6 }
0x1d73   :  { %v1080_v20 = vpop.eup %1079 }
0x1d74   :  { %751 = vrot.lane.b32.xlu2 %v1080_v20, %s1120_s19  ;;  %v1028_v20 = vld [vmem:[%s1379_s7] ss:$0 sm:$0xff] }
0x1dce   :  { %v752_v61 = vpop.permute.xlu2 %751 }
0x1dcf   :  { %v754_v24 = vmul.f32 %v752_v61, %v734_v15 }
0x1dd1   :  { %v755_v25 = vpack.c.bf16 %v754_v24, %v754_v24 }
0x1dd3   :  { %757 = vrot.lane.b32.xlu0 %v755_v25, %s1121_s20 }
0x1e45   :  { %v758_v26 = vpop.permute.xlu0 %757 }
0x1e46   :  { %1001 = vmatmul.msk.bf16.vlgmr.msrb.gmra.mxu1 %vm112_vm2, %v758_v26 }
0x1ec3   :  { %v771_v27 = vpop.f32.mrf.mxu1 }
0x1ec4   :  { %v776_v28 = vrot.slane %v771_v27, 6 }
0x1ec6   :  { %v778_v29 = vadd.f32 %v776_v28, %v1334_v60 }
0x1ec8   :  { %1081 = vtanh.f32 %v778_v29 }
0x1ecb   :  { %v773_v22 = vpop.f32.mrf.mxu1 }
0x1ece   :  { %v1082_v30 = vpop.eup %1081 }
0x1ecf   :  { %787 = vrot.lane.b32.xlu1 %v1082_v30, %s1120_s19  ;;  %v780_v31 = vmul.f32 0.5, %v1082_v30 }
0x1ed1   :  { %v781_v32 = vadd.f32 0.5, %v780_v31 }
0x1ed3   :  { %v785_v36 = vmul.f32 %v783_v35, %v781_v32 }
0x1f41   :  { %v788_v33 = vpop.permute.xlu1 %787 }
0x1f42   :  { %v790_v34 = vmul.f32 %v788_v33, %v781_v32 }
0x1f44   :  { %792 = vrot.lane.b32.xlu2 %v790_v34, %s1121_s20 }
0x1f9e   :  { %v793_v37 = vpop.permute.xlu2 %792 }
0x1f9f   :  { %v795_v38 = vadd.f32 %v793_v37, %v785_v36 }
0x1fa1   :  { %1083 = vtanh.f32 %v795_v38  ;;  %v831_v43 = vrot.slane %v795_v38, 6 }
0x1fa7   :  { %v1084_v39 = vpop.eup %1083 }
0x1fa8   :  { %798 = vrot.lane.b32.xlu0 %v1084_v39, %s1120_s19 }
0x201a   :  { %v799_v40 = vpop.permute.xlu0 %798 }
0x201b   :  { %v801_v41 = vmul.f32 %v799_v40, %v781_v32 }
0x201d   :  { %v802_v42 = vpack.c.bf16 %v801_v41, %v801_v41 }
0x201f   :  { %v804_v44 = vrot.slane %v802_v42, 1 }
0x2021   :  { %805 = vrot.lane.b32.xlu1 %v804_v44, %s1121_s20 }
0x2093   :  { %v806_v45 = vpop.permute.xlu1 %805 }
0x2094   :  { %1002 = vmatmul.msk.bf16.vlgmr.msra.gmra.mxu2 %vm112_vm2, %v806_v45 }
0x2117   :  { %v819_v11 = vpop.f32.mrf.mxu2 }
0x2118   :  { %v824_v46 = vrot.slane %v819_v11, 4 }
0x211a   :  { %v826_v47 = vadd.f32 %v824_v46, %v1334_v60 }
0x211c   :  { %1085 = vtanh.f32 %v826_v47 }
0x211f   :  { %v821_v48 = vpop.f32.mrf.mxu2 }
0x2122   :  { %v1086_v49 = vpop.eup %1085 }
0x2123   :  { %835 = vrot.lane.b32.xlu2 %v1086_v49, %s1120_s19  ;;  %v828_v50 = vmul.f32 0.5, %v1086_v49 }
0x2125   :  { %v829_v3 = vadd.f32 0.5, %v828_v50 }
0x2127   :  { %v833_v52 = vmul.f32 %v831_v43, %v829_v3 }
0x217d   :  { %v836_v51 = vpop.permute.xlu2 %835 }
0x217e   :  { %v838_v6 = vmul.f32 %v836_v51, %v829_v3 }
0x2180   :  { %840 = vrot.lane.b32.xlu0 %v838_v6, %s1121_s20 }
0x21f2   :  { %v841_v53 = vpop.permute.xlu0 %840 }
0x21f3   :  { %v843_v54 = vadd.f32 %v841_v53, %v833_v52 }
0x21f5   :  { %1087 = vtanh.f32 %v843_v54  ;;  %v879_v10 = vrot.slane %v843_v54, 6 }
0x21fb   :  { %v1088_v55 = vpop.eup %1087 }
0x21fc   :  { %846 = vrot.lane.b32.xlu1 %v1088_v55, %s1120_s19 }
0x226e   :  { %v847_v57 = vpop.permute.xlu1 %846 }
0x226f   :  { %v849_v58 = vmul.f32 %v847_v57, %v829_v3 }
0x2271   :  { %v850_v59 = vpack.c.bf16 %v849_v58, %v849_v58 }
0x2273   :  { %v852_v62 = vrot.slane %v850_v59, 2 }
0x2275   :  { %853 = vrot.lane.b32.xlu2 %v852_v62, %s1121_s20 }
0x22cf   :  { %v854_v63 = vpop.permute.xlu2 %853 }
0x22d0   :  { %1003 = vmatmul.msk.bf16.vlgmr.msra.gmra.mxu3 %vm112_vm2, %v854_v63 }
0x2353   :  { %v867_v0 = vpop.f32.mrf.mxu3 }
0x2354   :  { %v872_v1 = vrot.slane %v867_v0, 2 }
0x2356   :  { %v874_v2 = vadd.f32 %v872_v1, %v1334_v60  ;;  %v1021_v60 = vld [vmem:[%s1378_s6 + $0x8] sm:$0xff]  ;;  %s948_s6 = sshll.u32 %s1380_s8, 4  ;;  %s949_s6 = int_to_ptr.hbm [resolvable:$true] %s948_s6 }
0x2357   :  { %932 = vmatpush.bf16.msra.mxu0 %v1021_v60 }
0x2358   :  { %1089 = vtanh.f32 %v874_v2 }
0x235b   :  { %v869_v56 = vpop.f32.mrf.mxu3  ;;  %933 = vmatpush.bf16.msra.mxu0 %v1020_v16 }
0x235e   :  { %v1090_v4 = vpop.eup %1089 }
0x235f   :  { %883 = vrot.lane.b32.xlu0 %v1090_v4, %s1120_s19  ;;  %v876_v5 = vmul.f32 0.5, %v1090_v4 }
0x2361   :  { %v877_v7 = vadd.f32 0.5, %v876_v5 }
0x2363   :  { %v881_v12 = vmul.f32 %v879_v10, %v877_v7 }
0x23d1   :  { %v884_v8 = vpop.permute.xlu0 %883 }
0x23d2   :  { %v886_v9 = vmul.f32 %v884_v8, %v877_v7 }
0x23d4   :  { %888 = vrot.lane.b32.xlu1 %v886_v9, %s1121_s20 }
0x2446   :  { %v889_v13 = vpop.permute.xlu1 %888 }
0x2447   :  { %v891_v14 = vadd.f32 %v889_v13, %v881_v12 }
0x2449   :  { %1091 = vtanh.f32 %v891_v14 }
0x244f   :  { %v1092_v15 = vpop.eup %1091 }
0x2450   :  { %894 = vrot.lane.b32.xlu2 %v1092_v15, %s1120_s19 }
0x24aa   :  { %v895_v17 = vpop.permute.xlu2 %894 }
0x24ab   :  { %v897_v18 = vmul.f32 %v895_v17, %v877_v7 }
0x24ad   :  { %v898_v19 = vpack.c.bf16 %v897_v18, %v897_v18 }
0x24af   :  { %v908_v21 = vrot.slane %v898_v19, 3 }
0x24b1   :  { %909 = vrot.lane.b32.xlu0 %v908_v21, %s1121_s20 }
0x2523   :  { %v910_v23 = vpop.permute.xlu0 %909 }
0x2524   :  { %1012 = vmatmul.msk.bf16.vlgmr.msra.gmra.mxu0 %vm112_vm2, %v910_v23 }
0x25a1   :  { %v935_v61 = vpop.f32.mrf.mxu0 }
0x25a2   :  { %v936_v24 = vadd.f32 %v1028_v20, %v935_v61 }
0x25a4   :  { %940 = vst.msk [vmem:[#allocation2] sm:$0x3] %vm939_vm3, %v936_v24 }
0x25a5   :  { %951 = dma.vmem_to_hbm [thread:$0]  %s947_s28, 32, %s949_s6, [#allocation3]  }
0x25a9   :  { %v937_v25 = vpop.f32.mrf.mxu0 }
0x25aa   :  { %1117 = dma.done.wait [#allocation3], 32  }
0x25ab   :  { %1118 = vsyncadd [#allocation3], 4294967264 }
0x25ac   :  { %956 = vsyncpa [#allocation3], 1 }

</bundles_post_ra>
